<compile_context>
chip_gen: v6e
topology: v6e:2x2x1
jax: 0.10.0
libtpu: 0.0.40
codegen_flags: <defaults>
</compile_context>

<pallas_src>
import jax
import jax.numpy as jnp
from jax.experimental import pallas as pl
from jax.experimental.pallas import tpu as pltpu


_TILE_M_MAX = 1024    # batch rows per grid step (multiple of 256 for large batches)
_N_OUT_PAD = 128      # lane-dense output width; true logits are the first 10 columns
_N_CLASSES = 10


def _round_up(x, m):
    return ((x + m - 1) // m) * m


# ----------------------------------------------------------------------------
# Fused forward kernel: three MXU matmuls (bf16 operands, f32 accumulation)
# with f32 bias-add / ReLU epilogues.  HBM traffic: one f32 input tile, the
# (grid-resident) weights, and one lane-dense [tile_m, 128] f32 output slab.
# ----------------------------------------------------------------------------
def _fused_kernel(x_ref, w1_ref, b1_ref, w2_ref, b2_ref, w34_ref, b34_ref, o_ref):
    x = x_ref[...].astype(jnp.bfloat16)                               # [tm, 784]
    h = jnp.dot(x, w1_ref[...], preferred_element_type=jnp.float32)
    h = jnp.maximum(h + b1_ref[...], 0.0)                             # conv1 + ReLU
    h = jnp.dot(h.astype(jnp.bfloat16), w2_ref[...],
                preferred_element_type=jnp.float32)
    h = jnp.maximum(h + b2_ref[...], 0.0)                             # conv2 + ReLU
    h = jnp.dot(h.astype(jnp.bfloat16), w34_ref[...],
                preferred_element_type=jnp.float32) + b34_ref[...]    # enc_lin ∘ cls_lin
    o_ref[...] = h.astype(o_ref.dtype)


# ----------------------------------------------------------------------------
# Fused forward wrapper (jit-compiled)
# ----------------------------------------------------------------------------
def _pick_tile_m(n):
    """Static (trace-time) tile choice.  Small batches: one sublane-aligned
    step.  Large batches: a multiple of 256, sized so the parallel grid has at
    least 2 steps (keeps both v7x TensorCores busy)."""
    if n <= 256:
        return max(8, _round_up(n, 8))
    half = _round_up((n + 1) // 2, 256)
    return min(_TILE_M_MAX, half)


def _classifier_forward_impl(prep, x):
    """x: [N, Cin, H, W] (NCHW, f32) -> logits [N, 10] (f32)."""
    n, c_in, h_in, w_in = x.shape
    x_flat = x.transpose(0, 2, 3, 1).reshape(n, h_in * w_in * c_in)   # NHWC flatten (f32)

    tile_m = _pick_tile_m(n)
    n_pad = _round_up(n, tile_m)
    x_flat = jnp.pad(x_flat, ((0, n_pad - n), (0, 0)))                # stays f32

    k1 = x_flat.shape[1]
    f1 = prep["w1"].shape[1]
    f2 = prep["w2"].shape[1]
    n_out = prep["w34"].shape[1]                                      # 128 (lane-dense)

    flops = 2 * n_pad * (k1 * f1 + f1 * f2 + f2 * n_out)
    bytes_accessed = (
        n_pad * k1 * 4 + n_pad * n_out * 4
        + prep["w1"].size * 2 + prep["w2"].size * 2 + prep["w34"].size * 2
        + prep["b1"].size * 4 + prep["b2"].size * 4 + prep["b34"].size * 4)

    resident = lambda i: (0, 0)   # weights/biases: same block every grid step
    out = pl.pallas_call(
        _fused_kernel,
        out_shape=jax.ShapeDtypeStruct((n_pad, n_out), jnp.float32),
        grid_spec=pltpu.PrefetchScalarGridSpec(
            num_scalar_prefetch=0,
            grid=(n_pad // tile_m,),
            in_specs=[
                pl.BlockSpec((tile_m, k1), lambda i: (i, 0)),
                pl.BlockSpec((k1, f1), resident), pl.BlockSpec((1, f1), resident),
                pl.BlockSpec((f1, f2), resident), pl.BlockSpec((1, f2), resident),
                pl.BlockSpec((f2, n_out), resident), pl.BlockSpec((1, n_out), resident),
            ],
            out_specs=pl.BlockSpec((tile_m, n_out), lambda i: (i, 0)),
        ),
        compiler_params=pltpu.CompilerParams(
            dimension_semantics=("parallel",)),
        cost_estimate=pl.CostEstimate(
            flops=flops, transcendentals=0, bytes_accessed=bytes_accessed),
    )(x_flat, prep["w1"], prep["b1"], prep["w2"], prep["b2"],
      prep["w34"], prep["b34"])
    return out[:n, :_N_CLASSES]


classifier_forward = jax.jit(_classifier_forward_impl)


# ----------------------------------------------------------------------------
# One-time parameter preparation (off the hot path)
# ----------------------------------------------------------------------------
def _conv_as_matmul(weight, h_in, w_in, stride, pad):
    """Fold a Conv2d into a dense matrix W_eff such that
         nhwc_flat(conv(x)) = nhwc_flat(x) @ W_eff      (bias excluded).
    Built by pushing the identity basis through the convolution (exact)."""
    c_out, c_in, kh, kw = weight.shape
    h_out = (h_in + 2 * pad - kh) // stride + 1
    w_out = (w_in + 2 * pad - kw) // stride + 1
    k = h_in * w_in * c_in
    basis = jnp.eye(k, dtype=weight.dtype).reshape(k, h_in, w_in, c_in)
    basis = basis.transpose(0, 3, 1, 2)                       # NCHW basis images
    resp = jax.lax.conv_general_dilated(
        basis, weight, window_strides=(stride, stride),
        padding=((pad, pad), (pad, pad)),
        dimension_numbers=("NCHW", "OIHW", "NCHW"))           # [k, c_out, h_out, w_out]
    w_eff = resp.transpose(0, 2, 3, 1).reshape(k, h_out * w_out * c_out)
    return w_eff, h_out, w_out


def prepare_params(params, h_in=28, w_in=28):
    """Reshuffle PyTorch-layout params into the fused-kernel layout:
    conv -> Toeplitz matmul weights, NHWC-ordered + head-folded linear weight,
    bf16 matmul operands, f32 (1, F)-shaped biases, 128-lane-padded head."""
    w1_eff, ho1, wo1 = _conv_as_matmul(params["conv1_w"], h_in, w_in, 2, 1)
    b1_eff = jnp.tile(params["conv1_b"], ho1 * wo1)           # (oh, ow, co) order
    w2_eff, ho2, wo2 = _conv_as_matmul(params["conv2_w"], ho1, wo1, 2, 1)
    b2_eff = jnp.tile(params["conv2_b"], ho2 * wo2)

    latent = params["enc_lin_w"].shape[0]
    c2 = params["conv2_w"].shape[0]
    # torch flattens (co, oh, ow); our activations are (oh, ow, co) -> reorder once.
    w3 = (params["enc_lin_w"].reshape(latent, c2, ho2, wo2)
          .transpose(2, 3, 1, 0).reshape(ho2 * wo2 * c2, latent)).astype(jnp.float32)
    w4 = params["cls_lin_w"].T.astype(jnp.float32)            # [latent, 10]

    # No activation between encoder linear and classifier head -> fold them
    # into one matmul (exact, f32), then zero-pad output width to 128 lanes.
    w34 = w3 @ w4                                              # [f2, 10]
    b34 = params["enc_lin_b"].astype(jnp.float32) @ w4 + params["cls_lin_b"]
    w34 = jnp.pad(w34, ((0, 0), (0, _N_OUT_PAD - w34.shape[1])))
    b34 = jnp.pad(b34, (0, _N_OUT_PAD - b34.shape[0]))

    bf16 = lambda a: a.astype(jnp.bfloat16)
    row = lambda b: b.astype(jnp.float32).reshape(1, -1)
    return {
        "w1": bf16(w1_eff), "b1": row(b1_eff),
        "w2": bf16(w2_eff), "b2": row(b2_eff),
        "w34": bf16(w34), "b34": row(b34),
    }


# ----------------------------------------------------------------------------
# Deterministic parameter init (PyTorch-style uniform(+-1/sqrt(fan_in)))
# ----------------------------------------------------------------------------
def init_params(key, capacity, latent_dims):
    c = capacity

    def uni(key, shape, fan_in):
        bound = 1.0 / jnp.sqrt(fan_in)
        return jax.random.uniform(key, shape, jnp.float32, -bound, bound)

    keys = jax.random.split(key, 8)
    return {
        "conv1_w": uni(keys[0], (c, 1, 4, 4), 1 * 4 * 4),
        "conv1_b": uni(keys[1], (c,), 1 * 4 * 4),
        "conv2_w": uni(keys[2], (2 * c, c, 4, 4), c * 4 * 4),
        "conv2_b": uni(keys[3], (2 * c,), c * 4 * 4),
        "enc_lin_w": uni(keys[4], (latent_dims, 2 * c * 7 * 7), 2 * c * 7 * 7),  # [out, in]
        "enc_lin_b": uni(keys[5], (latent_dims,), 2 * c * 7 * 7),
        "cls_lin_w": uni(keys[6], (10, latent_dims), latent_dims),               # [out, in]
        "cls_lin_b": uni(keys[7], (10,), latent_dims),
    }


# ----------------------------------------------------------------------------
# Pure-JAX reference (lax conv) for a correctness sanity check
# ----------------------------------------------------------------------------
def reference_forward(params, x):
    def conv(x, w, b):
        y = jax.lax.conv_general_dilated(
            x, w, window_strides=(2, 2), padding=((1, 1), (1, 1)),
            dimension_numbers=("NCHW", "OIHW", "NCHW"))
        return jnp.maximum(y + b[None, :, None, None], 0.0)

    x = conv(x, params["conv1_w"], params["conv1_b"])
    x = conv(x, params["conv2_w"], params["conv2_b"])
    x = x.reshape(x.shape[0], -1)
    x = x @ params["enc_lin_w"].T + params["enc_lin_b"]
    x = x @ params["cls_lin_w"].T + params["cls_lin_b"]
    return x


if __name__ == "__main__":
    capacity, latent_dims = 4, 32
    key = jax.random.PRNGKey(0)
    k_param, k_x = jax.random.split(key)

    params = init_params(k_param, capacity, latent_dims)
    prep = prepare_params(params)                      # one-time weight reshuffle
    x = jax.random.normal(k_x, (2, 1, 28, 28), jnp.float32)  # NCHW, MNIST-sized

    out = classifier_forward(prep, x)
    out = jax.block_until_ready(out)
    assert out.shape == (2, 10), out.shape

    ref = jax.block_until_ready(reference_forward(params, x))
    # bf16 matmul operands (f32 accumulation) vs. the f32 reference.
    assert jnp.allclose(out, ref, rtol=3e-2, atol=3e-2), "mismatch vs JAX reference"

    print("KERNEL_OK")
</pallas_src>

<mosaic_0001>
module attributes {stable_mosaic.version = 11 : i64} {
  func.func @_fused_kernel(%arg0: i32, %arg1: memref<8x784xf32, #tpu.memory_space<vmem>>, %arg2: memref<784x784xbf16, #tpu.memory_space<vmem>>, %arg3: memref<1x784xf32, #tpu.memory_space<vmem>>, %arg4: memref<784x392xbf16, #tpu.memory_space<vmem>>, %arg5: memref<1x392xf32, #tpu.memory_space<vmem>>, %arg6: memref<392x128xbf16, #tpu.memory_space<vmem>>, %arg7: memref<1x128xf32, #tpu.memory_space<vmem>>, %arg8: memref<8x128xf32, #tpu.memory_space<vmem>>) attributes {dimension_semantics = [#tpu.dimension_semantics<parallel>], iteration_bounds = array<i64: 1>, scalar_prefetch = 0 : i64, scratch_operands = 0 : i64, tpu.core_type = #tpu.core_type<tc>, window_params = [{transform_indices = @transform_0, window_bounds = array<i64: 8, 784>}, {pipeline_mode = #tpu.pipeline_mode<synchronous>, transform_indices = @transform_1, window_bounds = array<i64: 784, 784>}, {pipeline_mode = #tpu.pipeline_mode<synchronous>, transform_indices = @transform_2, window_bounds = array<i64: 1, 784>}, {pipeline_mode = #tpu.pipeline_mode<synchronous>, transform_indices = @transform_3, window_bounds = array<i64: 784, 392>}, {pipeline_mode = #tpu.pipeline_mode<synchronous>, transform_indices = @transform_4, window_bounds = array<i64: 1, 392>}, {pipeline_mode = #tpu.pipeline_mode<synchronous>, transform_indices = @transform_5, window_bounds = array<i64: 392, 128>}, {pipeline_mode = #tpu.pipeline_mode<synchronous>, transform_indices = @transform_6, window_bounds = array<i64: 1, 128>}, {transform_indices = @transform_7, window_bounds = array<i64: 8, 128>}]} {
    %c0 = arith.constant 0 : index
    %c0_0 = arith.constant 0 : index
    %0 = vector.load %arg1[%c0, %c0_0] : memref<8x784xf32, #tpu.memory_space<vmem>>, vector<8x784xf32>
    %1 = arith.truncf %0 : vector<8x784xf32> to vector<8x784xbf16>
    %c0_1 = arith.constant 0 : index
    %c0_2 = arith.constant 0 : index
    %2 = vector.load %arg2[%c0_1, %c0_2] : memref<784x784xbf16, #tpu.memory_space<vmem>>, vector<784x784xbf16>
    %cst = arith.constant dense<0.000000e+00> : vector<8x784xf32>
    %3 = tpu.matmul %1, %2, %cst {dimension_numbers = #tpu.dot_dimension_numbers<[1], [0], [0], [1], [0, 0, 1, 1], [], []>} : vector<8x784xbf16>, vector<784x784xbf16>, vector<8x784xf32> -> vector<8x784xf32>
    %c0_3 = arith.constant 0 : index
    %c0_4 = arith.constant 0 : index
    %4 = vector.load %arg3[%c0_3, %c0_4] : memref<1x784xf32, #tpu.memory_space<vmem>>, vector<1x784xf32>
    %5 = vector.broadcast %4 : vector<1x784xf32> to vector<8x784xf32>
    %6 = arith.addf %3, %5 : vector<8x784xf32>
    %cst_5 = arith.constant 0.000000e+00 : f32
    %7 = vector.broadcast %cst_5 : f32 to vector<8x784xf32>
    %8 = arith.maximumf %6, %7 : vector<8x784xf32>
    %9 = arith.truncf %8 : vector<8x784xf32> to vector<8x784xbf16>
    %c0_6 = arith.constant 0 : index
    %c0_7 = arith.constant 0 : index
    %10 = vector.load %arg4[%c0_6, %c0_7] : memref<784x392xbf16, #tpu.memory_space<vmem>>, vector<784x392xbf16>
    %cst_8 = arith.constant dense<0.000000e+00> : vector<8x392xf32>
    %11 = tpu.matmul %9, %10, %cst_8 {dimension_numbers = #tpu.dot_dimension_numbers<[1], [0], [0], [1], [0, 0, 1, 1], [], []>} : vector<8x784xbf16>, vector<784x392xbf16>, vector<8x392xf32> -> vector<8x392xf32>
    %c0_9 = arith.constant 0 : index
    %c0_10 = arith.constant 0 : index
    %12 = vector.load %arg5[%c0_9, %c0_10] : memref<1x392xf32, #tpu.memory_space<vmem>>, vector<1x392xf32>
    %13 = vector.broadcast %12 : vector<1x392xf32> to vector<8x392xf32>
    %14 = arith.addf %11, %13 : vector<8x392xf32>
    %cst_11 = arith.constant 0.000000e+00 : f32
    %15 = vector.broadcast %cst_11 : f32 to vector<8x392xf32>
    %16 = arith.maximumf %14, %15 : vector<8x392xf32>
    %17 = arith.truncf %16 : vector<8x392xf32> to vector<8x392xbf16>
    %c0_12 = arith.constant 0 : index
    %c0_13 = arith.constant 0 : index
    %18 = vector.load %arg6[%c0_12, %c0_13] : memref<392x128xbf16, #tpu.memory_space<vmem>>, vector<392x128xbf16>
    %cst_14 = arith.constant dense<0.000000e+00> : vector<8x128xf32>
    %19 = tpu.matmul %17, %18, %cst_14 {dimension_numbers = #tpu.dot_dimension_numbers<[1], [0], [0], [1], [0, 0, 1, 1], [], []>} : vector<8x392xbf16>, vector<392x128xbf16>, vector<8x128xf32> -> vector<8x128xf32>
    %c0_15 = arith.constant 0 : index
    %c0_16 = arith.constant 0 : index
    %20 = vector.load %arg7[%c0_15, %c0_16] : memref<1x128xf32, #tpu.memory_space<vmem>>, vector<1x128xf32>
    %21 = vector.broadcast %20 : vector<1x128xf32> to vector<8x128xf32>
    %22 = arith.addf %19, %21 : vector<8x128xf32>
    %c0_17 = arith.constant 0 : index
    %c0_18 = arith.constant 0 : index
    %23 = vector.load %arg8[%c0_17, %c0_18] : memref<8x128xf32, #tpu.memory_space<vmem>>, vector<8x128xf32>
    tpu.vector_store %arg8[%c0_17, %c0_18], %22 {strides = array<i32>} : memref<8x128xf32, #tpu.memory_space<vmem>>, vector<8x128xf32>,
    return
  }
  func.func @transform_0(%arg0: i32) -> (i32, i32) {
    %c0_i32 = arith.constant 0 : i32
    %c0_i32_0 = arith.constant 0 : i32
    return %arg0, %c0_i32 : i32, i32
  }
  func.func @transform_1(%arg0: i32) -> (i32, i32) {
    %c0_i32 = arith.constant 0 : i32
    %c0_i32_0 = arith.constant 0 : i32
    %c0_i32_1 = arith.constant 0 : i32
    return %c0_i32, %c0_i32_0 : i32, i32
  }
  func.func @transform_2(%arg0: i32) -> (i32, i32) {
    %c0_i32 = arith.constant 0 : i32
    %c0_i32_0 = arith.constant 0 : i32
    %c0_i32_1 = arith.constant 0 : i32
    return %c0_i32, %c0_i32_0 : i32, i32
  }
  func.func @transform_3(%arg0: i32) -> (i32, i32) {
    %c0_i32 = arith.constant 0 : i32
    %c0_i32_0 = arith.constant 0 : i32
    %c0_i32_1 = arith.constant 0 : i32
    return %c0_i32, %c0_i32_0 : i32, i32
  }
  func.func @transform_4(%arg0: i32) -> (i32, i32) {
    %c0_i32 = arith.constant 0 : i32
    %c0_i32_0 = arith.constant 0 : i32
    %c0_i32_1 = arith.constant 0 : i32
    return %c0_i32, %c0_i32_0 : i32, i32
  }
  func.func @transform_5(%arg0: i32) -> (i32, i32) {
    %c0_i32 = arith.constant 0 : i32
    %c0_i32_0 = arith.constant 0 : i32
    %c0_i32_1 = arith.constant 0 : i32
    return %c0_i32, %c0_i32_0 : i32, i32
  }
  func.func @transform_6(%arg0: i32) -> (i32, i32) {
    %c0_i32 = arith.constant 0 : i32
    %c0_i32_0 = arith.constant 0 : i32
    %c0_i32_1 = arith.constant 0 : i32
    return %c0_i32, %c0_i32_0 : i32, i32
  }
  func.func @transform_7(%arg0: i32) -> (i32, i32) {
    %c0_i32 = arith.constant 0 : i32
    %c0_i32_0 = arith.constant 0 : i32
    return %arg0, %c0_i32 : i32, i32
  }
}

</mosaic_0001>

<bundles_post_ra>
// kernel: _classifier_forward_impl.1
= control target key start
LH: loop header
LB: loop body
LE: loop exit
PB: predicated region body
PF: predicated region fallthrough
CT: control target
= control target key end

     0   :  { %vm2234_vm0 = vcmask 130048   ;;  %vm6220_vm1 = vmmov 0   ;;  %vm4648_vm2 = vcmask 1043456   ;;  %vm4644_vm3 = vcmask 64512   ;;  %s8144_s1 = inlined_call_operand.vmem [shape: bf16[784,784], index: 1, kind: input, shape index: {}]   ;;  %s8145_s0 = inlined_call_operand.vmem [shape: f32[8,784], index: 0, kind: input, shape index: {}]   ;;  %s8146_s3 = inlined_call_operand.vmem [shape: bf16[784,392], index: 3, kind: input, shape index: {}]   ;;  %s8147_s2 = inlined_call_operand.vmem [shape: f32[1,784], index: 2, kind: input, shape index: {}]   ;;  %s8148_s5 = inlined_call_operand.vmem [shape: bf16[392,128], index: 5, kind: input, shape index: {}]   ;;  %s8149_s4 = inlined_call_operand.vmem [shape: f32[1,392], index: 4, kind: input, shape index: {}]   ;;  %s8150_s6 = inlined_call_operand.vmem [shape: f32[1,128], index: 6, kind: input, shape index: {}]   ;;  %s8151_s7 = inlined_call_operand.vmem [shape: f32[8,128], index: 7, kind: output, shape index: {}]  }
   0x1   :  { %v5408_v0 = vld [vmem:[%s8144_s1 + $0x18c] ss:$28 sps:$4 sm:$0xff]   ;;  %v5414_v4 = vld [vmem:[%s8144_s1 + $0x154] ss:$28 sps:$4 sm:$0xff]   ;;  %v5420_v8 = vld [vmem:[%s8144_s1 + $0x11c] ss:$28 sps:$4 sm:$0xff]  }
   0x2   :  { %v5410_v1 = vld [vmem:[%s8144_s1 + $0x50c] ss:$28 sps:$4 sm:$0xff]   ;;  %2238 = vmatprep.subr.bf16.mxu0 %v5408_v0  ;;  %v5416_v5 = vld [vmem:[%s8144_s1 + $0x4d4] ss:$28 sps:$4 sm:$0xff]   ;;  %v5422_v9 = vld [vmem:[%s8144_s1 + $0x49c] ss:$28 sps:$4 sm:$0xff]  }
   0x3   :  { %v5412_v2 = vld [vmem:[%s8144_s1 + $0x188] ss:$28 sps:$4 sm:$0xff]   ;;  %2279 = vmatprep.subr.bf16.mxu1 %v5410_v1  ;;  %v5418_v6 = vld [vmem:[%s8144_s1 + $0x150] ss:$28 sps:$4 sm:$0xff]   ;;  %v5424_v10 = vld [vmem:[%s8144_s1 + $0x118] ss:$28 sps:$4 sm:$0xff]  }
   0x4   :  { %v5413_v3 = vld [vmem:[%s8144_s1 + $0x508] ss:$28 sps:$4 sm:$0xff]   ;;  %2239 = vmatpush1.bf16.msra.mxu0 %v5412_v2  ;;  %v5419_v7 = vld [vmem:[%s8144_s1 + $0x4d0] ss:$28 sps:$4 sm:$0xff]   ;;  %v5425_v11 = vld [vmem:[%s8144_s1 + $0x498] ss:$28 sps:$4 sm:$0xff]  }
   0x5   :  { %2280 = vmatpush1.bf16.msra.mxu1 %v5413_v3  ;;  %2240 = vmatprep.subr.bf16.mxu0 %v5414_v4  ;;  %v5426_v12 = vld [vmem:[%s8144_s1 + $0xe4] ss:$28 sps:$4 sm:$0xff]   ;;  %v5432_v16 = vld [vmem:[%s8144_s1 + $0xac] ss:$28 sps:$4 sm:$0xff]   ;;  %v5438_v20 = vld [vmem:[%s8144_s1 + $0x74] ss:$28 sps:$4 sm:$0xff]  }
   0x6   :  { %2281 = vmatprep.subr.bf16.mxu1 %v5416_v5  ;;  %v5428_v13 = vld [vmem:[%s8144_s1 + $0x464] ss:$28 sps:$4 sm:$0xff]   ;;  %v5434_v17 = vld [vmem:[%s8144_s1 + $0x42c] ss:$28 sps:$4 sm:$0xff]   ;;  %v5440_v21 = vld [vmem:[%s8144_s1 + $0x3f4] ss:$28 sps:$4 sm:$0xff]  }
   0x7   :  { %v5430_v14 = vld [vmem:[%s8144_s1 + $0xe0] ss:$28 sps:$4 sm:$0xff]   ;;  %v5436_v18 = vld [vmem:[%s8144_s1 + $0xa8] ss:$28 sps:$4 sm:$0xff]   ;;  %v5442_v22 = vld [vmem:[%s8144_s1 + $0x70] ss:$28 sps:$4 sm:$0xff]  }
   0x8   :  { %2241 = vmatpush1.bf16.msra.mxu0 %v5418_v6  ;;  %v5431_v15 = vld [vmem:[%s8144_s1 + $0x460] ss:$28 sps:$4 sm:$0xff]   ;;  %v5437_v19 = vld [vmem:[%s8144_s1 + $0x428] ss:$28 sps:$4 sm:$0xff]   ;;  %v5443_v23 = vld [vmem:[%s8144_s1 + $0x3f0] ss:$28 sps:$4 sm:$0xff]  }
   0x9   :  { %2282 = vmatpush1.bf16.msra.mxu1 %v5419_v7  ;;  %2242 = vmatprep.subr.bf16.mxu0 %v5420_v8  ;;  %v5444_v24 = vld [vmem:[%s8144_s1 + $0x3c] ss:$28 sps:$4 sm:$0xff]   ;;  %v5450_v28 = vld [vmem:[%s8144_s1 + $0x4] ss:$28 sps:$4 sm:$0xff]   ;;  %v5456_v32 = vld [vmem:[%s8144_s1 + $0x34c] ss:$28 sps:$4 sm:$0xff]  }
   0xa   :  { %2283 = vmatprep.subr.bf16.mxu1 %v5422_v9  ;;  %v5446_v25 = vld [vmem:[%s8144_s1 + $0x3bc] ss:$28 sps:$4 sm:$0xff]   ;;  %v5452_v29 = vld [vmem:[%s8144_s1 + $0x384] ss:$28 sps:$4 sm:$0xff]   ;;  %v5458_v33 = vld [vmem:[%s8144_s1 + $0x6cc] ss:$28 sps:$4 sm:$0xff]  }
   0xb   :  { %v5448_v26 = vld [vmem:[%s8144_s1 + $0x38] ss:$28 sps:$4 sm:$0xff]   ;;  %v5454_v30 = vld [vmem:[%s8144_s1] ss:$28 sps:$4 sm:$0xff]   ;;  %v5460_v34 = vld [vmem:[%s8144_s1 + $0x348] ss:$28 sps:$4 sm:$0xff]  }
   0xc   :  { %2243 = vmatpush1.bf16.msra.mxu0 %v5424_v10  ;;  %v5449_v27 = vld [vmem:[%s8144_s1 + $0x3b8] ss:$28 sps:$4 sm:$0xff]   ;;  %v5455_v31 = vld [vmem:[%s8144_s1 + $0x380] ss:$28 sps:$4 sm:$0xff]   ;;  %v5461_v35 = vld [vmem:[%s8144_s1 + $0x6c8] ss:$28 sps:$4 sm:$0xff]  }
   0xd   :  { %2284 = vmatpush1.bf16.msra.mxu1 %v5425_v11  ;;  %2244 = vmatprep.subr.bf16.mxu0 %v5426_v12  ;;  %v5462_v36 = vld [vmem:[%s8144_s1 + $0x314] ss:$28 sps:$4 sm:$0xff]   ;;  %v5468_v40 = vld [vmem:[%s8144_s1 + $0x2dc] ss:$28 sps:$4 sm:$0xff]   ;;  %v5474_v44 = vld [vmem:[%s8144_s1 + $0x2a4] ss:$28 sps:$4 sm:$0xff]  }
   0xe   :  { %2285 = vmatprep.subr.bf16.mxu1 %v5428_v13  ;;  %v5464_v37 = vld [vmem:[%s8144_s1 + $0x694] ss:$28 sps:$4 sm:$0xff]   ;;  %v5470_v41 = vld [vmem:[%s8144_s1 + $0x65c] ss:$28 sps:$4 sm:$0xff]   ;;  %v5476_v45 = vld [vmem:[%s8144_s1 + $0x624] ss:$28 sps:$4 sm:$0xff]  }
   0xf   :  { %v5466_v38 = vld [vmem:[%s8144_s1 + $0x310] ss:$28 sps:$4 sm:$0xff]   ;;  %v5472_v42 = vld [vmem:[%s8144_s1 + $0x2d8] ss:$28 sps:$4 sm:$0xff]   ;;  %v5478_v47 = vld [vmem:[%s8144_s1 + $0x2a0] ss:$28 sps:$4 sm:$0xff]  }
  0x10   :  { %2245 = vmatpush1.bf16.msra.mxu0 %v5430_v14  ;;  %v5467_v39 = vld [vmem:[%s8144_s1 + $0x690] ss:$28 sps:$4 sm:$0xff]   ;;  %v5473_v43 = vld [vmem:[%s8144_s1 + $0x658] ss:$28 sps:$4 sm:$0xff]   ;;  %v5479_v48 = vld [vmem:[%s8144_s1 + $0x620] ss:$28 sps:$4 sm:$0xff]  }
  0x11   :  { %2286 = vmatpush1.bf16.msra.mxu1 %v5431_v15  ;;  %2246 = vmatprep.subr.bf16.mxu0 %v5432_v16  ;;  %v28_v46 = vld [vmem:[%s8145_s0 + $0x8] sm:$0xff]  ;;  %v30_v50 = vld [vmem:[%s8145_s0 + $0x18] sm:$0xff]  ;;  %v5486_v56 = vld [vmem:[%s8144_s1 + $0x234] ss:$28 sps:$4 sm:$0xff]   ;;  %v6218_v16 = vmov 0  }
  0x12   :  { %2287 = vmatprep.subr.bf16.mxu1 %v5434_v17  ;;  %v6408_v49 = vpack.c.bf16 %v28_v46, %v28_v46  ;;  %v5480_v51 = vld [vmem:[%s8144_s1 + $0x26c] ss:$28 sps:$4 sm:$0xff]   ;;  %v6416_v52 = vpack.c.bf16 %v30_v50, %v30_v50  ;;  %v5488_v57 = vld [vmem:[%s8144_s1 + $0x5b4] ss:$28 sps:$4 sm:$0xff]   ;;  %v5492_v60 = vld [vmem:[%s8144_s1 + $0x1fc] ss:$28 sps:$4 sm:$0xff]  }
  0x13   :  { %v5482_v53 = vld [vmem:[%s8144_s1 + $0x5ec] ss:$28 sps:$4 sm:$0xff]   ;;  %v5494_v61 = vld [vmem:[%s8144_s1 + $0x57c] ss:$28 sps:$4 sm:$0xff]   ;;  %v5498_v0 = vld [vmem:[%s8144_s1 + $0x1c4] ss:$28 sps:$4 sm:$0xff]  }
  0x14   :  { %2247 = vmatpush1.bf16.msra.mxu0 %v5436_v18  ;;  %2270 = vmatprep.mubr.bf16.mxu0 %v6408_v49  ;;  %v5484_v54 = vld [vmem:[%s8144_s1 + $0x268] ss:$28 sps:$4 sm:$0xff]   ;;  %v5490_v58 = vld [vmem:[%s8144_s1 + $0x230] ss:$28 sps:$4 sm:$0xff]   ;;  %v5496_v62 = vld [vmem:[%s8144_s1 + $0x1f8] ss:$28 sps:$4 sm:$0xff]  }
  0x15   :  { %2288 = vmatpush1.bf16.msra.mxu1 %v5437_v19  ;;  %2248 = vmatprep.subr.bf16.mxu0 %v5438_v20  ;;  %v5485_v55 = vld [vmem:[%s8144_s1 + $0x5e8] ss:$28 sps:$4 sm:$0xff]   ;;  %v5491_v59 = vld [vmem:[%s8144_s1 + $0x5b0] ss:$28 sps:$4 sm:$0xff]   ;;  %v5497_v63 = vld [vmem:[%s8144_s1 + $0x578] ss:$28 sps:$4 sm:$0xff]  }
  0x16   :  { %2289 = vmatprep.subr.bf16.mxu1 %v5440_v21  ;;  %2311 = vmatprep.mubr.bf16.mxu1 %v6416_v52  ;;  %v5500_v1 = vld [vmem:[%s8144_s1 + $0x544] ss:$28 sps:$4 sm:$0xff]   ;;  %v29_v5 = vld [vmem:[%s8145_s0 + $0x10] sm:$0xff]  ;;  %v5506_v6 = vld [vmem:[%s8144_s1 + $0x88c] ss:$28 sps:$4 sm:$0xff]  }
  0x17   :  { %v5502_v2 = vld [vmem:[%s8144_s1 + $0x1c0] ss:$28 sps:$4 sm:$0xff]   ;;  %v6479_v9 = vpack.c.bf16 %v29_v5, %v29_v5  ;;  %v5504_v10 = vld [vmem:[%s8144_s1 + $0x888] ss:$28 sps:$4 sm:$0xff]   ;;  %v5512_v12 = vld [vmem:[%s8144_s1 + $0x854] ss:$28 sps:$4 sm:$0xff]  }
  0x18   :  { %2249 = vmatpush1.bf16.msra.mxu0 %v5442_v22  ;;  %v5503_v3 = vld [vmem:[%s8144_s1 + $0x540] ss:$28 sps:$4 sm:$0xff]   ;;  %v5515_v13 = vld [vmem:[%s8144_s1 + $0x194] ss:$28 sps:$4 sm:$0xff]   ;;  %v5552_v46 = vld [vmem:[%s8144_s1 + $0xa48] ss:$28 sps:$4 sm:$0xff]  }
  0x19   :  { %2290 = vmatpush1.bf16.msra.mxu1 %v5443_v23  ;;  %2250 = vmatprep.subr.bf16.mxu0 %v5444_v24  ;;  %v27_v4 = vld [vmem:[%s8145_s0] sm:$0xff]  ;;  %v5510_v14 = vld [vmem:[%s8144_s1 + $0x850] ss:$28 sps:$4 sm:$0xff]   ;;  %v5518_v17 = vld [vmem:[%s8144_s1 + $0x81c] ss:$28 sps:$4 sm:$0xff]  }
  0x1a   :  { %2291 = vmatprep.subr.bf16.mxu1 %v5446_v25  ;;  %v5509_v7 = vld [vmem:[%s8144_s1 + $0xa84] ss:$28 sps:$4 sm:$0xff]   ;;  %v6477_v8 = vpack.c.bf16 %v27_v4, %v27_v4  ;;  %v33_v15 = vld [vmem:[%s8145_s0 + $0x30] sm:$0xff]  ;;  %v5521_v21 = vld [vmem:[%s8144_s1 + $0x15c] ss:$28 sps:$4 sm:$0xff]  }
  0x1b   :  { %v5507_v11 = vld [vmem:[%s8144_s1 + $0xa80] ss:$28 sps:$4 sm:$0xff]   ;;  %v5513_v18 = vld [vmem:[%s8144_s1 + $0x190] ss:$28 sps:$4 sm:$0xff]   ;;  %v6508_v19 = vpack.c.bf16 %v33_v15, %v33_v15  ;;  %v5516_v20 = vld [vmem:[%s8144_s1 + $0x818] ss:$28 sps:$4 sm:$0xff]  }
  0x1c   :  { %2251 = vmatpush1.bf16.msra.mxu0 %v5448_v26  ;;  %v5524_v22 = vld [vmem:[%s8144_s1 + $0x7e4] ss:$28 sps:$4 sm:$0xff]   ;;  %v5519_v23 = vld [vmem:[%s8144_s1 + $0x158] ss:$28 sps:$4 sm:$0xff]   ;;  %v5530_v26 = vld [vmem:[%s8144_s1 + $0x7ac] ss:$28 sps:$4 sm:$0xff]  }
  0x1d   :  { %2292 = vmatpush1.bf16.msra.mxu1 %v5449_v27  ;;  %2252 = vmatprep.subr.bf16.mxu0 %v5450_v28  ;;  %v5522_v24 = vld [vmem:[%s8144_s1 + $0x7e0] ss:$28 sps:$4 sm:$0xff]   ;;  %v5528_v28 = vld [vmem:[%s8144_s1 + $0x7a8] ss:$28 sps:$4 sm:$0xff]   ;;  %v5582_v4 = vld [vmem:[%s8144_s1 + $0x930] ss:$28 sps:$4 sm:$0xff]  }
  0x1e   :  { %2293 = vmatprep.subr.bf16.mxu1 %v5452_v29  ;;  %v5527_v25 = vld [vmem:[%s8144_s1 + $0x124] ss:$28 sps:$4 sm:$0xff]   ;;  %v5533_v29 = vld [vmem:[%s8144_s1 + $0xec] ss:$28 sps:$4 sm:$0xff]   ;;  %v5587_v5 = vld [vmem:[%s8144_s1 + $0x274] ss:$28 sps:$4 sm:$0xff]  }
  0x1f   :  { %v5525_v27 = vld [vmem:[%s8144_s1 + $0x120] ss:$28 sps:$4 sm:$0xff]   ;;  %v5555_v50 = vld [vmem:[%s8144_s1 + $0x8] ss:$28 sps:$4 sm:$0xff]  }
  0x20   :  { %2253 = vmatpush1.bf16.msra.mxu0 %v5454_v30  ;;  %v5536_v30 = vld [vmem:[%s8144_s1 + $0x774] ss:$28 sps:$4 sm:$0xff]   ;;  %v5599_v15 = vld [vmem:[%s8144_s1 + $0x204] ss:$28 sps:$4 sm:$0xff]  }
  0x21   :  { %2294 = vmatpush1.bf16.msra.mxu1 %v5455_v31  ;;  %2254 = vmatprep.subr.bf16.mxu0 %v5456_v32  ;;  %v5531_v31 = vld [vmem:[%s8144_s1 + $0xe8] ss:$28 sps:$4 sm:$0xff]   ;;  %v5534_v32 = vld [vmem:[%s8144_s1 + $0x770] ss:$28 sps:$4 sm:$0xff]  }
  0x22   :  { %2295 = vmatprep.subr.bf16.mxu1 %v5458_v33  ;;  %v5539_v33 = vld [vmem:[%s8144_s1 + $0xb4] ss:$28 sps:$4 sm:$0xff]  }
  0x24   :  { %2255 = vmatpush2.bf16.msra.mxu0 %v5460_v34  ;;  %v5542_v34 = vld [vmem:[%s8144_s1 + $0x73c] ss:$28 sps:$4 sm:$0xff]  }
  0x25   :  { %2296 = vmatpush2.bf16.msra.mxu1 %v5461_v35  ;;  %2256 = vmatprep.subr.bf16.mxu0 %v5462_v36  ;;  %v32_v35 = vld [vmem:[%s8145_s0 + $0x28] sm:$0xff] }
  0x26   :  { %2297 = vmatprep.subr.bf16.mxu1 %v5464_v37  ;;  %v6561_v36 = vpack.c.bf16 %v32_v35, %v32_v35  ;;  %v5537_v37 = vld [vmem:[%s8144_s1 + $0xb0] ss:$28 sps:$4 sm:$0xff]   ;;  %v5623_v35 = vld [vmem:[%s8144_s1 + $0x824] ss:$28 sps:$4 sm:$0xff]  }
  0x28   :  { %2257 = vmatpush2.bf16.msra.mxu0 %v5466_v38  ;;  %v5540_v38 = vld [vmem:[%s8144_s1 + $0x738] ss:$28 sps:$4 sm:$0xff]  }
  0x29   :  { %2298 = vmatpush2.bf16.msra.mxu1 %v5467_v39  ;;  %2258 = vmatprep.subr.bf16.mxu0 %v5468_v40  ;;  %v5545_v39 = vld [vmem:[%s8144_s1 + $0x7c] ss:$28 sps:$4 sm:$0xff]   ;;  %v5548_v40 = vld [vmem:[%s8144_s1 + $0x704] ss:$28 sps:$4 sm:$0xff]  }
  0x2a   :  { %2299 = vmatprep.subr.bf16.mxu1 %v5470_v41  ;;  %v5543_v41 = vld [vmem:[%s8144_s1 + $0x78] ss:$28 sps:$4 sm:$0xff]  }
  0x2c   :  { %2259 = vmatpush2.bf16.msra.mxu0 %v5472_v42  ;;  %v5546_v42 = vld [vmem:[%s8144_s1 + $0x700] ss:$28 sps:$4 sm:$0xff]  }
  0x2d   :  { %2300 = vmatpush2.bf16.msra.mxu1 %v5473_v43  ;;  %2260 = vmatprep.subr.bf16.mxu0 %v5474_v44  ;;  %v5551_v43 = vld [vmem:[%s8144_s1 + $0x44] ss:$28 sps:$4 sm:$0xff]   ;;  %v5554_v44 = vld [vmem:[%s8144_s1 + $0xa4c] ss:$28 sps:$4 sm:$0xff]  }
  0x2e   :  { %2301 = vmatprep.subr.bf16.mxu1 %v5476_v45  ;;  %v5549_v45 = vld [vmem:[%s8144_s1 + $0x40] ss:$28 sps:$4 sm:$0xff]  }
  0x30   :  { %2261 = vmatpush2.bf16.msra.mxu0 %v5478_v47  ;;  %v5557_v47 = vld [vmem:[%s8144_s1 + $0xc] ss:$28 sps:$4 sm:$0xff]  }
  0x31   :  { %2302 = vmatpush2.bf16.msra.mxu1 %v5479_v48  ;;  %2262 = vmatprep.subr.bf16.mxu0 %v5480_v51  ;;  %v5560_v48 = vld [vmem:[%s8144_s1 + $0xa14] ss:$28 sps:$4 sm:$0xff]  }
  0x32   :  { %2303 = vmatprep.subr.bf16.mxu1 %v5482_v53  ;;  %v5558_v51 = vld [vmem:[%s8144_s1 + $0xa10] ss:$28 sps:$4 sm:$0xff]  }
  0x33   :  { %v5563_v53 = vld [vmem:[%s8144_s1 + $0x354] ss:$28 sps:$4 sm:$0xff]  }
  0x34   :  { %2263 = vmatpush2.bf16.msra.mxu0 %v5484_v54  ;;  %v5566_v54 = vld [vmem:[%s8144_s1 + $0x9dc] ss:$28 sps:$4 sm:$0xff]  }
  0x35   :  { %2304 = vmatpush2.bf16.msra.mxu1 %v5485_v55  ;;  %2264 = vmatprep.subr.bf16.mxu0 %v5486_v56  ;;  %v5561_v55 = vld [vmem:[%s8144_s1 + $0x350] ss:$28 sps:$4 sm:$0xff]   ;;  %v5564_v56 = vld [vmem:[%s8144_s1 + $0x9d8] ss:$28 sps:$4 sm:$0xff]  }
  0x36   :  { %2305 = vmatprep.subr.bf16.mxu1 %v5488_v57  ;;  %v5569_v57 = vld [vmem:[%s8144_s1 + $0x31c] ss:$28 sps:$4 sm:$0xff]  }
  0x38   :  { %2265 = vmatpush2.bf16.msra.mxu0 %v5490_v58  ;;  %v5572_v58 = vld [vmem:[%s8144_s1 + $0x9a4] ss:$28 sps:$4 sm:$0xff]  }
  0x39   :  { %2306 = vmatpush2.bf16.msra.mxu1 %v5491_v59  ;;  %2266 = vmatprep.subr.bf16.mxu0 %v5492_v60  ;;  %v5567_v59 = vld [vmem:[%s8144_s1 + $0x318] ss:$28 sps:$4 sm:$0xff]   ;;  %v5570_v60 = vld [vmem:[%s8144_s1 + $0x9a0] ss:$28 sps:$4 sm:$0xff]  }
  0x3a   :  { %2307 = vmatprep.subr.bf16.mxu1 %v5494_v61  ;;  %v5575_v61 = vld [vmem:[%s8144_s1 + $0x2e4] ss:$28 sps:$4 sm:$0xff]  }
  0x3c   :  { %2267 = vmatpush2.bf16.msra.mxu0 %v5496_v62  ;;  %v5578_v62 = vld [vmem:[%s8144_s1 + $0x96c] ss:$28 sps:$4 sm:$0xff]  }
  0x3d   :  { %2308 = vmatpush2.bf16.msra.mxu1 %v5497_v63  ;;  %2268 = vmatprep.subr.bf16.mxu0 %v5498_v0  ;;  %v5573_v63 = vld [vmem:[%s8144_s1 + $0x2e0] ss:$28 sps:$4 sm:$0xff]   ;;  %v5576_v0 = vld [vmem:[%s8144_s1 + $0x968] ss:$28 sps:$4 sm:$0xff]  }
  0x3e   :  { %2309 = vmatprep.subr.bf16.mxu1 %v5500_v1  ;;  %v5581_v1 = vld [vmem:[%s8144_s1 + $0x2ac] ss:$28 sps:$4 sm:$0xff]  }
  0x40   :  { %2269 = vmatpush2.bf16.msra.mxu0 %v5502_v2  ;;  %v5584_v2 = vld [vmem:[%s8144_s1 + $0x934] ss:$28 sps:$4 sm:$0xff]  }
  0x41   :  { %2310 = vmatpush2.bf16.msra.mxu1 %v5503_v3  ;;  %2320 = vmatprep.subr.bf16.mxu0 %v5506_v6  ;;  %v5579_v3 = vld [vmem:[%s8144_s1 + $0x2a8] ss:$28 sps:$4 sm:$0xff]   ;;  %v5590_v6 = vld [vmem:[%s8144_s1 + $0x8fc] ss:$28 sps:$4 sm:$0xff]  }
  0x42   :  { %2375 = vmatprep.subr.bf16.mxu1 %v5509_v7  ;;  %v5585_v7 = vld [vmem:[%s8144_s1 + $0x270] ss:$28 sps:$4 sm:$0xff]  }
  0x43   :  { %2271 = vmatmul.mubr.bf16.vlgmr.msra.gmra.mxu0 %v6477_v8 }
  0x44   :  { %2312 = vmatmul.mubr.bf16.vlgmr.msra.gmra.mxu1 %v6479_v9  ;;  %2321 = vmatpush1.bf16.msra.mxu0 %v5504_v10  ;;  %v5588_v10 = vld [vmem:[%s8144_s1 + $0x8f8] ss:$28 sps:$4 sm:$0xff]  }
  0x45   :  { %2376 = vmatpush1.bf16.msra.mxu1 %v5507_v11  ;;  %2322 = vmatprep.subr.bf16.mxu0 %v5512_v12  ;;  %v5593_v11 = vld [vmem:[%s8144_s1 + $0x23c] ss:$28 sps:$4 sm:$0xff]   ;;  %v5596_v12 = vld [vmem:[%s8144_s1 + $0x8c4] ss:$28 sps:$4 sm:$0xff]  }
  0x46   :  { %2393 = vmatprep.mubr.bf16.mxu1 %v6218_v16  ;;  %2402 = vmatprep.subr.bf16.mxu1 %v5515_v13  ;;  %v5591_v13 = vld [vmem:[%s8144_s1 + $0x238] ss:$28 sps:$4 sm:$0xff]  }
  0x47   :  { %2352 = vmatprep.mubr.bf16.mxu0 %v6561_v36 }
  0x48   :  { %2323 = vmatpush1.bf16.msra.mxu0 %v5510_v14  ;;  %v5594_v14 = vld [vmem:[%s8144_s1 + $0x8c0] ss:$28 sps:$4 sm:$0xff]  }
  0x49   :  { %2324 = vmatprep.subr.bf16.mxu0 %v5518_v17  ;;  %v31_v17 = vld [vmem:[%s8145_s0 + $0x20] sm:$0xff] }
  0x4c   :  { %5080 = vmatmul.mubr.msk.bf16.vlgmr.msra.gmra.mxu1 %vm2234_vm0, %v6508_v19  ;;  %2325 = vmatpush1.bf16.msra.mxu0 %v5516_v20  ;;  %v5597_v20 = vld [vmem:[%s8144_s1 + $0x200] ss:$28 sps:$4 sm:$0xff]  }
  0x4d   :  { %2403 = vmatpush1.bf16.msra.mxu1 %v5513_v18  ;;  %2326 = vmatprep.subr.bf16.mxu0 %v5524_v22  ;;  %v5602_v18 = vld [vmem:[%s8144_s1 + $0x514] ss:$28 sps:$4 sm:$0xff]  }
  0x4e   :  { %2404 = vmatprep.subr.bf16.mxu1 %v5521_v21  ;;  %2434 = vmatprep.mubr.bf16.mxu1 %v6408_v49  ;;  %v6690_v21 = vpack.c.bf16 %v31_v17, %v31_v17  ;;  %v5600_v22 = vld [vmem:[%s8144_s1 + $0x510] ss:$28 sps:$4 sm:$0xff]  }
  0x4f   :  { %v5683_v17 = vld [vmem:[%s8144_s1 + $0x974] ss:$28 sps:$4 sm:$0xff]  }
  0x50   :  { %2327 = vmatpush1.bf16.msra.mxu0 %v5522_v24  ;;  %v5608_v24 = vld [vmem:[%s8144_s1 + $0x4dc] ss:$28 sps:$4 sm:$0xff]  }
  0x51   :  { %2405 = vmatpush1.bf16.msra.mxu1 %v5519_v23  ;;  %2328 = vmatprep.subr.bf16.mxu0 %v5530_v26  ;;  %v5605_v23 = vld [vmem:[%s8144_s1 + $0x1cc] ss:$28 sps:$4 sm:$0xff]   ;;  %v5606_v26 = vld [vmem:[%s8144_s1 + $0x4d8] ss:$28 sps:$4 sm:$0xff]  }
  0x52   :  { %2406 = vmatprep.subr.bf16.mxu1 %v5527_v25  ;;  %v5603_v25 = vld [vmem:[%s8144_s1 + $0x1c8] ss:$28 sps:$4 sm:$0xff]  }
  0x54   :  { %2329 = vmatpush1.bf16.msra.mxu0 %v5528_v28  ;;  %v5614_v28 = vld [vmem:[%s8144_s1 + $0x4a4] ss:$28 sps:$4 sm:$0xff]  }
  0x55   :  { %2407 = vmatpush1.bf16.msra.mxu1 %v5525_v27  ;;  %2330 = vmatprep.subr.bf16.mxu0 %v5536_v30  ;;  %v5611_v27 = vld [vmem:[%s8144_s1 + $0x894] ss:$28 sps:$4 sm:$0xff]   ;;  %v5612_v30 = vld [vmem:[%s8144_s1 + $0x4a0] ss:$28 sps:$4 sm:$0xff]  }
  0x56   :  { %2408 = vmatprep.subr.bf16.mxu1 %v5533_v29  ;;  %v5609_v29 = vld [vmem:[%s8144_s1 + $0x890] ss:$28 sps:$4 sm:$0xff]  }
  0x58   :  { %2331 = vmatpush1.bf16.msra.mxu0 %v5534_v32  ;;  %v5620_v32 = vld [vmem:[%s8144_s1 + $0x46c] ss:$28 sps:$4 sm:$0xff]  }
  0x59   :  { %2409 = vmatpush1.bf16.msra.mxu1 %v5531_v31  ;;  %2332 = vmatprep.subr.bf16.mxu0 %v5542_v34  ;;  %v5617_v31 = vld [vmem:[%s8144_s1 + $0x85c] ss:$28 sps:$4 sm:$0xff]   ;;  %v5618_v34 = vld [vmem:[%s8144_s1 + $0x468] ss:$28 sps:$4 sm:$0xff]  }
  0x5a   :  { %2410 = vmatprep.subr.bf16.mxu1 %v5539_v33  ;;  %v5615_v33 = vld [vmem:[%s8144_s1 + $0x858] ss:$28 sps:$4 sm:$0xff]  }
  0x5c   :  { %2333 = vmatpush1.bf16.msra.mxu0 %v5540_v38  ;;  %v5621_v38 = vld [vmem:[%s8144_s1 + $0x820] ss:$28 sps:$4 sm:$0xff]  }
  0x5d   :  { %2411 = vmatpush1.bf16.msra.mxu1 %v5537_v37  ;;  %2334 = vmatprep.subr.bf16.mxu0 %v5548_v40  ;;  %v5626_v37 = vld [vmem:[%s8144_s1 + $0x434] ss:$28 sps:$4 sm:$0xff]   ;;  %v5629_v40 = vld [vmem:[%s8144_s1 + $0x7ec] ss:$28 sps:$4 sm:$0xff]  }
  0x5e   :  { %2412 = vmatprep.subr.bf16.mxu1 %v5545_v39  ;;  %v5624_v39 = vld [vmem:[%s8144_s1 + $0x430] ss:$28 sps:$4 sm:$0xff]  }
  0x60   :  { %2335 = vmatpush1.bf16.msra.mxu0 %v5546_v42  ;;  %v5627_v42 = vld [vmem:[%s8144_s1 + $0x7e8] ss:$28 sps:$4 sm:$0xff]  }
  0x61   :  { %2413 = vmatpush1.bf16.msra.mxu1 %v5543_v41  ;;  %2336 = vmatprep.subr.bf16.mxu0 %v5554_v44  ;;  %v5632_v41 = vld [vmem:[%s8144_s1 + $0x3fc] ss:$28 sps:$4 sm:$0xff]   ;;  %v5635_v44 = vld [vmem:[%s8144_s1 + $0x7b4] ss:$28 sps:$4 sm:$0xff]  }
  0x62   :  { %2414 = vmatprep.subr.bf16.mxu1 %v5551_v43  ;;  %v5630_v43 = vld [vmem:[%s8144_s1 + $0x3f8] ss:$28 sps:$4 sm:$0xff]  }
  0x64   :  { %2337 = vmatpush2.bf16.msra.mxu0 %v5552_v46  ;;  %v5633_v46 = vld [vmem:[%s8144_s1 + $0x7b0] ss:$28 sps:$4 sm:$0xff]  }
  0x65   :  { %2415 = vmatpush1.bf16.msra.mxu1 %v5549_v45  ;;  %2338 = vmatprep.subr.bf16.mxu0 %v5560_v48  ;;  %v5638_v45 = vld [vmem:[%s8144_s1 + $0x3c4] ss:$28 sps:$4 sm:$0xff]   ;;  %v5641_v48 = vld [vmem:[%s8144_s1 + $0x77c] ss:$28 sps:$4 sm:$0xff]  }
  0x66   :  { %2416 = vmatprep.subr.bf16.mxu1 %v5557_v47  ;;  %v5636_v47 = vld [vmem:[%s8144_s1 + $0x3c0] ss:$28 sps:$4 sm:$0xff]  }
  0x68   :  { %2339 = vmatpush2.bf16.msra.mxu0 %v5558_v51  ;;  %v5639_v51 = vld [vmem:[%s8144_s1 + $0x778] ss:$28 sps:$4 sm:$0xff]  }
  0x69   :  { %2417 = vmatpush1.bf16.msra.mxu1 %v5555_v50  ;;  %2340 = vmatprep.subr.bf16.mxu0 %v5566_v54  ;;  %v5644_v50 = vld [vmem:[%s8144_s1 + $0x38c] ss:$28 sps:$4 sm:$0xff]   ;;  %v5647_v54 = vld [vmem:[%s8144_s1 + $0x744] ss:$28 sps:$4 sm:$0xff]  }
  0x6a   :  { %2418 = vmatprep.subr.bf16.mxu1 %v5563_v53  ;;  %v5642_v53 = vld [vmem:[%s8144_s1 + $0x388] ss:$28 sps:$4 sm:$0xff]  }
  0x6c   :  { %2341 = vmatpush2.bf16.msra.mxu0 %v5564_v56  ;;  %v5645_v56 = vld [vmem:[%s8144_s1 + $0x740] ss:$28 sps:$4 sm:$0xff]  }
  0x6d   :  { %2419 = vmatpush2.bf16.msra.mxu1 %v5561_v55  ;;  %2342 = vmatprep.subr.bf16.mxu0 %v5572_v58  ;;  %v5650_v55 = vld [vmem:[%s8144_s1 + $0x6d4] ss:$28 sps:$4 sm:$0xff]   ;;  %v5653_v58 = vld [vmem:[%s8144_s1 + $0x70c] ss:$28 sps:$4 sm:$0xff]  }
  0x6e   :  { %2420 = vmatprep.subr.bf16.mxu1 %v5569_v57  ;;  %v5648_v57 = vld [vmem:[%s8144_s1 + $0x6d0] ss:$28 sps:$4 sm:$0xff]  }
  0x70   :  { %2343 = vmatpush2.bf16.msra.mxu0 %v5570_v60  ;;  %v5651_v60 = vld [vmem:[%s8144_s1 + $0x708] ss:$28 sps:$4 sm:$0xff]  }
  0x71   :  { %2421 = vmatpush2.bf16.msra.mxu1 %v5567_v59  ;;  %2344 = vmatprep.subr.bf16.mxu0 %v5578_v62  ;;  %v5656_v59 = vld [vmem:[%s8144_s1 + $0x69c] ss:$28 sps:$4 sm:$0xff]   ;;  %v5659_v62 = vld [vmem:[%s8144_s1 + $0xa54] ss:$28 sps:$4 sm:$0xff]  }
  0x72   :  { %2422 = vmatprep.subr.bf16.mxu1 %v5575_v61  ;;  %v5654_v61 = vld [vmem:[%s8144_s1 + $0x698] ss:$28 sps:$4 sm:$0xff]  }
  0x74   :  { %2345 = vmatpush2.bf16.msra.mxu0 %v5576_v0  ;;  %v5657_v0 = vld [vmem:[%s8144_s1 + $0xa50] ss:$28 sps:$4 sm:$0xff]  }
  0x75   :  { %2423 = vmatpush2.bf16.msra.mxu1 %v5573_v63  ;;  %2346 = vmatprep.subr.bf16.mxu0 %v5584_v2  ;;  %v5662_v63 = vld [vmem:[%s8144_s1 + $0x664] ss:$28 sps:$4 sm:$0xff]   ;;  %v5665_v2 = vld [vmem:[%s8144_s1 + $0xa1c] ss:$28 sps:$4 sm:$0xff]  }
  0x76   :  { %2424 = vmatprep.subr.bf16.mxu1 %v5581_v1  ;;  %v5660_v1 = vld [vmem:[%s8144_s1 + $0x660] ss:$28 sps:$4 sm:$0xff]  }
  0x78   :  { %2347 = vmatpush2.bf16.msra.mxu0 %v5582_v4  ;;  %v5663_v4 = vld [vmem:[%s8144_s1 + $0xa18] ss:$28 sps:$4 sm:$0xff]  }
  0x79   :  { %2425 = vmatpush2.bf16.msra.mxu1 %v5579_v3  ;;  %2348 = vmatprep.subr.bf16.mxu0 %v5590_v6  ;;  %v5668_v3 = vld [vmem:[%s8144_s1 + $0x62c] ss:$28 sps:$4 sm:$0xff]   ;;  %v5671_v6 = vld [vmem:[%s8144_s1 + $0x9e4] ss:$28 sps:$4 sm:$0xff]  }
  0x7a   :  { %2426 = vmatprep.subr.bf16.mxu1 %v5587_v5  ;;  %v5666_v5 = vld [vmem:[%s8144_s1 + $0x628] ss:$28 sps:$4 sm:$0xff]  }
  0x7c   :  { %2349 = vmatpush2.bf16.msra.mxu0 %v5588_v10  ;;  %v5669_v10 = vld [vmem:[%s8144_s1 + $0x9e0] ss:$28 sps:$4 sm:$0xff]  }
  0x7d   :  { %2427 = vmatpush2.bf16.msra.mxu1 %v5585_v7  ;;  %2350 = vmatprep.subr.bf16.mxu0 %v5596_v12  ;;  %v5674_v7 = vld [vmem:[%s8144_s1 + $0x5f4] ss:$28 sps:$4 sm:$0xff]   ;;  %v5677_v12 = vld [vmem:[%s8144_s1 + $0x9ac] ss:$28 sps:$4 sm:$0xff]  }
  0x7e   :  { %2428 = vmatprep.subr.bf16.mxu1 %v5593_v11  ;;  %v5672_v11 = vld [vmem:[%s8144_s1 + $0x5f0] ss:$28 sps:$4 sm:$0xff]  }
  0x80   :  { %2351 = vmatpush2.bf16.msra.mxu0 %v5594_v14  ;;  %v5675_v14 = vld [vmem:[%s8144_s1 + $0x9a8] ss:$28 sps:$4 sm:$0xff]  }
  0x81   :  { %2429 = vmatpush2.bf16.msra.mxu1 %v5591_v13  ;;  %2443 = vmatprep.subr.bf16.mxu0 %v5602_v18  ;;  %v5680_v13 = vld [vmem:[%s8144_s1 + $0x5bc] ss:$28 sps:$4 sm:$0xff]   ;;  %v5686_v18 = vld [vmem:[%s8144_s1 + $0x584] ss:$28 sps:$4 sm:$0xff]  }
  0x82   :  { %2430 = vmatprep.subr.bf16.mxu1 %v5599_v15  ;;  %v5678_v15 = vld [vmem:[%s8144_s1 + $0x5b8] ss:$28 sps:$4 sm:$0xff]  }
  0x83   :  { %2353 = vmatmul.mubr.bf16.vlgmr.msra.gmra.mxu0 %v6690_v21 }
  0x84   :  { %2444 = vmatpush1.bf16.msra.mxu0 %v5600_v22  ;;  %2475 = vmatprep.mubr.bf16.mxu0 %v6416_v52  ;;  %v5684_v22 = vld [vmem:[%s8144_s1 + $0x580] ss:$28 sps:$4 sm:$0xff]  }
  0x85   :  { %2431 = vmatpush2.bf16.msra.mxu1 %v5597_v20  ;;  %2445 = vmatprep.subr.bf16.mxu0 %v5608_v24  ;;  %v5681_v20 = vld [vmem:[%s8144_s1 + $0x970] ss:$28 sps:$4 sm:$0xff]  }
  0x86   :  { %2432 = vmatprep.subr.bf16.mxu1 %v5605_v23  ;;  %v5689_v23 = vld [vmem:[%s8144_s1 + $0x93c] ss:$28 sps:$4 sm:$0xff]   ;;  %v5692_v24 = vld [vmem:[%s8144_s1 + $0x54c] ss:$28 sps:$4 sm:$0xff]  }
  0x88   :  { %2446 = vmatpush1.bf16.msra.mxu0 %v5606_v26  ;;  %v5690_v26 = vld [vmem:[%s8144_s1 + $0x548] ss:$28 sps:$4 sm:$0xff]  }
  0x89   :  { %2433 = vmatpush2.bf16.msra.mxu1 %v5603_v25  ;;  %2447 = vmatprep.subr.bf16.mxu0 %v5614_v28  ;;  %v5687_v25 = vld [vmem:[%s8144_s1 + $0x938] ss:$28 sps:$4 sm:$0xff]  }
  0x8a   :  { %2484 = vmatprep.subr.bf16.mxu1 %v5611_v27  ;;  %v5695_v27 = vld [vmem:[%s8144_s1 + $0x904] ss:$28 sps:$4 sm:$0xff]   ;;  %v5698_v28 = vld [vmem:[%s8144_s1 + $0x19c] ss:$28 sps:$4 sm:$0xff]  }
  0x8c   :  { %2435 = vmatmul.mubr.bf16.vlgmr.msra.gmra.mxu1 %v6477_v8  ;;  %2448 = vmatpush1.bf16.msra.mxu0 %v5612_v30  ;;  %v5696_v30 = vld [vmem:[%s8144_s1 + $0x198] ss:$28 sps:$4 sm:$0xff]  }
  0x8d   :  { %2485 = vmatpush1.bf16.msra.mxu1 %v5609_v29  ;;  %2449 = vmatprep.subr.bf16.mxu0 %v5620_v32  ;;  %v5693_v29 = vld [vmem:[%s8144_s1 + $0x900] ss:$28 sps:$4 sm:$0xff]  }
  0x8e   :  { %2486 = vmatprep.subr.bf16.mxu1 %v5617_v31  ;;  %2516 = vmatprep.mubr.bf16.mxu1 %v6561_v36  ;;  %v5701_v31 = vld [vmem:[%s8144_s1 + $0x8cc] ss:$28 sps:$4 sm:$0xff]   ;;  %v5704_v32 = vld [vmem:[%s8144_s1 + $0x164] ss:$28 sps:$4 sm:$0xff]  }
  0x90   :  { %2450 = vmatpush1.bf16.msra.mxu0 %v5618_v34  ;;  %v5702_v34 = vld [vmem:[%s8144_s1 + $0x160] ss:$28 sps:$4 sm:$0xff]  }
  0x91   :  { %2487 = vmatpush1.bf16.msra.mxu1 %v5615_v33  ;;  %2451 = vmatprep.subr.bf16.mxu0 %v5626_v37  ;;  %v5699_v33 = vld [vmem:[%s8144_s1 + $0x8c8] ss:$28 sps:$4 sm:$0xff]  }
  0x92   :  { %2488 = vmatprep.subr.bf16.mxu1 %v5623_v35  ;;  %v5707_v35 = vld [vmem:[%s8144_s1 + $0x12c] ss:$28 sps:$4 sm:$0xff]  }
  0x93   :  { %v5710_v37 = vld [vmem:[%s8144_s1 + $0xa8c] ss:$28 sps:$4 sm:$0xff]  }
  0x94   :  { %2452 = vmatpush1.bf16.msra.mxu0 %v5624_v39  ;;  %v5708_v39 = vld [vmem:[%s8144_s1 + $0xa88] ss:$28 sps:$4 sm:$0xff]  }
  0x95   :  { %2489 = vmatpush1.bf16.msra.mxu1 %v5621_v38  ;;  %2453 = vmatprep.subr.bf16.mxu0 %v5632_v41  ;;  %v5705_v38 = vld [vmem:[%s8144_s1 + $0x128] ss:$28 sps:$4 sm:$0xff]   ;;  %v5716_v41 = vld [vmem:[%s8144_s1 + $0x51c] ss:$28 sps:$4 sm:$0xff]  }
  0x96   :  { %2490 = vmatprep.subr.bf16.mxu1 %v5629_v40  ;;  %v5713_v40 = vld [vmem:[%s8144_s1 + $0xf4] ss:$28 sps:$4 sm:$0xff]  }
  0x98   :  { %2454 = vmatpush1.bf16.msra.mxu0 %v5630_v43  ;;  %v5719_v43 = vld [vmem:[%s8144_s1 + $0xbc] ss:$28 sps:$4 sm:$0xff]  }
  0x99   :  { %2491 = vmatpush1.bf16.msra.mxu1 %v5627_v42  ;;  %2455 = vmatprep.subr.bf16.mxu0 %v5638_v45  ;;  %v5711_v42 = vld [vmem:[%s8144_s1 + $0xf0] ss:$28 sps:$4 sm:$0xff]   ;;  %v5717_v45 = vld [vmem:[%s8144_s1 + $0xb8] ss:$28 sps:$4 sm:$0xff]  }
  0x9a   :  { %2492 = vmatprep.subr.bf16.mxu1 %v5635_v44  ;;  %v5714_v44 = vld [vmem:[%s8144_s1 + $0x518] ss:$28 sps:$4 sm:$0xff]  }
  0x9c   :  { %2456 = vmatpush1.bf16.msra.mxu0 %v5636_v47  ;;  %v5725_v47 = vld [vmem:[%s8144_s1 + $0x84] ss:$28 sps:$4 sm:$0xff]  }
  0x9d   :  { %2493 = vmatpush1.bf16.msra.mxu1 %v5633_v46  ;;  %2457 = vmatprep.subr.bf16.mxu0 %v5644_v50  ;;  %v5722_v46 = vld [vmem:[%s8144_s1 + $0x4e4] ss:$28 sps:$4 sm:$0xff]  }
  0x9e   :  { %2494 = vmatprep.subr.bf16.mxu1 %v5641_v48  ;;  %v5720_v48 = vld [vmem:[%s8144_s1 + $0x4e0] ss:$28 sps:$4 sm:$0xff]  }
  0x9f   :  { %v5723_v50 = vld [vmem:[%s8144_s1 + $0x80] ss:$28 sps:$4 sm:$0xff]  }
  0xa0   :  { %2458 = vmatpush1.bf16.msra.mxu0 %v5642_v53  ;;  %v5731_v53 = vld [vmem:[%s8144_s1 + $0x4c] ss:$28 sps:$4 sm:$0xff]  }
  0xa1   :  { %2495 = vmatpush1.bf16.msra.mxu1 %v5639_v51  ;;  %2459 = vmatprep.subr.bf16.mxu0 %v5650_v55  ;;  %v5728_v51 = vld [vmem:[%s8144_s1 + $0x4ac] ss:$28 sps:$4 sm:$0xff]  }
  0xa2   :  { %2496 = vmatprep.subr.bf16.mxu1 %v5647_v54  ;;  %v5726_v54 = vld [vmem:[%s8144_s1 + $0x4a8] ss:$28 sps:$4 sm:$0xff]  }
  0xa3   :  { %v5729_v55 = vld [vmem:[%s8144_s1 + $0x48] ss:$28 sps:$4 sm:$0xff]  }
  0xa4   :  { %2460 = vmatpush2.bf16.msra.mxu0 %v5648_v57  ;;  %v5737_v57 = vld [vmem:[%s8144_s1 + $0x14] ss:$28 sps:$4 sm:$0xff]  }
  0xa5   :  { %2497 = vmatpush1.bf16.msra.mxu1 %v5645_v56  ;;  %2461 = vmatprep.subr.bf16.mxu0 %v5656_v59  ;;  %v5734_v56 = vld [vmem:[%s8144_s1 + $0x474] ss:$28 sps:$4 sm:$0xff]  }
  0xa6   :  { %2498 = vmatprep.subr.bf16.mxu1 %v5653_v58  ;;  %v5732_v58 = vld [vmem:[%s8144_s1 + $0x470] ss:$28 sps:$4 sm:$0xff]  }
  0xa7   :  { %v5735_v59 = vld [vmem:[%s8144_s1 + $0x10] ss:$28 sps:$4 sm:$0xff]  }
  0xa8   :  { %2462 = vmatpush2.bf16.msra.mxu0 %v5654_v61  ;;  %v5743_v61 = vld [vmem:[%s8144_s1 + $0x35c] ss:$28 sps:$4 sm:$0xff]  }
  0xa9   :  { %2499 = vmatpush1.bf16.msra.mxu1 %v5651_v60  ;;  %2463 = vmatprep.subr.bf16.mxu0 %v5662_v63  ;;  %v5740_v60 = vld [vmem:[%s8144_s1 + $0x43c] ss:$28 sps:$4 sm:$0xff]  }
  0xaa   :  { %2500 = vmatprep.subr.bf16.mxu1 %v5659_v62  ;;  %v5738_v62 = vld [vmem:[%s8144_s1 + $0x438] ss:$28 sps:$4 sm:$0xff]  }
  0xab   :  { %v5741_v63 = vld [vmem:[%s8144_s1 + $0x358] ss:$28 sps:$4 sm:$0xff]  }
  0xac   :  { %2464 = vmatpush2.bf16.msra.mxu0 %v5660_v1  ;;  %v5749_v1 = vld [vmem:[%s8144_s1 + $0x324] ss:$28 sps:$4 sm:$0xff]  }
  0xad   :  { %2501 = vmatpush2.bf16.msra.mxu1 %v5657_v0  ;;  %2465 = vmatprep.subr.bf16.mxu0 %v5668_v3  ;;  %v5746_v0 = vld [vmem:[%s8144_s1 + $0x404] ss:$28 sps:$4 sm:$0xff]  }
  0xae   :  { %2502 = vmatprep.subr.bf16.mxu1 %v5665_v2  ;;  %v5744_v2 = vld [vmem:[%s8144_s1 + $0x400] ss:$28 sps:$4 sm:$0xff]  }
  0xaf   :  { %v5747_v3 = vld [vmem:[%s8144_s1 + $0x320] ss:$28 sps:$4 sm:$0xff]  }
  0xb0   :  { %2466 = vmatpush2.bf16.msra.mxu0 %v5666_v5  ;;  %v5755_v5 = vld [vmem:[%s8144_s1 + $0x2ec] ss:$28 sps:$4 sm:$0xff]  }
  0xb1   :  { %2503 = vmatpush2.bf16.msra.mxu1 %v5663_v4  ;;  %2467 = vmatprep.subr.bf16.mxu0 %v5674_v7  ;;  %v5752_v4 = vld [vmem:[%s8144_s1 + $0x3cc] ss:$28 sps:$4 sm:$0xff]  }
  0xb2   :  { %2504 = vmatprep.subr.bf16.mxu1 %v5671_v6  ;;  %v5750_v6 = vld [vmem:[%s8144_s1 + $0x3c8] ss:$28 sps:$4 sm:$0xff]  }
  0xb3   :  { %v5753_v7 = vld [vmem:[%s8144_s1 + $0x2e8] ss:$28 sps:$4 sm:$0xff]  }
  0xb4   :  { %2468 = vmatpush2.bf16.msra.mxu0 %v5672_v11  ;;  %v5761_v11 = vld [vmem:[%s8144_s1 + $0x2b4] ss:$28 sps:$4 sm:$0xff]  }
  0xb5   :  { %2505 = vmatpush2.bf16.msra.mxu1 %v5669_v10  ;;  %2469 = vmatprep.subr.bf16.mxu0 %v5680_v13  ;;  %v5758_v10 = vld [vmem:[%s8144_s1 + $0x394] ss:$28 sps:$4 sm:$0xff]  }
  0xb6   :  { %2506 = vmatprep.subr.bf16.mxu1 %v5677_v12  ;;  %v5756_v12 = vld [vmem:[%s8144_s1 + $0x390] ss:$28 sps:$4 sm:$0xff]  }
  0xb7   :  { %v5759_v13 = vld [vmem:[%s8144_s1 + $0x2b0] ss:$28 sps:$4 sm:$0xff]  }
  0xb8   :  { %2470 = vmatpush2.bf16.msra.mxu0 %v5678_v15  ;;  %v5767_v15 = vld [vmem:[%s8144_s1 + $0x27c] ss:$28 sps:$4 sm:$0xff]  }
  0xb9   :  { %2507 = vmatpush2.bf16.msra.mxu1 %v5675_v14  ;;  %2471 = vmatprep.subr.bf16.mxu0 %v5686_v18  ;;  %v5764_v14 = vld [vmem:[%s8144_s1 + $0x6dc] ss:$28 sps:$4 sm:$0xff]  }
  0xba   :  { %2508 = vmatprep.subr.bf16.mxu1 %v5683_v17  ;;  %v5762_v17 = vld [vmem:[%s8144_s1 + $0x6d8] ss:$28 sps:$4 sm:$0xff]  }
  0xbb   :  { %v5765_v18 = vld [vmem:[%s8144_s1 + $0x278] ss:$28 sps:$4 sm:$0xff]  }
  0xbc   :  { %2472 = vmatpush2.bf16.msra.mxu0 %v5684_v22  ;;  %v5773_v22 = vld [vmem:[%s8144_s1 + $0x244] ss:$28 sps:$4 sm:$0xff]  }
  0xbd   :  { %2509 = vmatpush2.bf16.msra.mxu1 %v5681_v20  ;;  %2473 = vmatprep.subr.bf16.mxu0 %v5692_v24  ;;  %v5770_v20 = vld [vmem:[%s8144_s1 + $0x6a4] ss:$28 sps:$4 sm:$0xff]  }
  0xbe   :  { %2510 = vmatprep.subr.bf16.mxu1 %v5689_v23  ;;  %v5768_v23 = vld [vmem:[%s8144_s1 + $0x6a0] ss:$28 sps:$4 sm:$0xff]  }
  0xbf   :  { %v5771_v24 = vld [vmem:[%s8144_s1 + $0x240] ss:$28 sps:$4 sm:$0xff]  }
  0xc0   :  { %2474 = vmatpush2.bf16.msra.mxu0 %v5690_v26  ;;  %v5776_v26 = vld [vmem:[%s8144_s1 + $0x66c] ss:$28 sps:$4 sm:$0xff]  }
  0xc1   :  { %2511 = vmatpush2.bf16.msra.mxu1 %v5687_v25  ;;  %2566 = vmatprep.subr.bf16.mxu0 %v5698_v28  ;;  %v435_v25 = vlaneseq  ;;  %v5774_v28 = vld [vmem:[%s8144_s1 + $0x668] ss:$28 sps:$4 sm:$0xff]  }
  0xc2   :  { %2512 = vmatprep.subr.bf16.mxu1 %v5695_v27  ;;  %v5779_v27 = vld [vmem:[%s8144_s1 + $0x20c] ss:$28 sps:$4 sm:$0xff]  }
  0xc3   :  { %2476 = vmatmul.mubr.bf16.vlgmr.msra.gmra.mxu0 %v6479_v9 }
  0xc4   :  { %2567 = vmatpush1.bf16.msra.mxu0 %v5696_v30  ;;  %2598 = vmatprep.mubr.bf16.mxu0 %v6408_v49  ;;  %v7060_v30 = vshrl.u32 %v435_v25, 7  ;;  %v5821_v25 = vld [vmem:[%s8144_s1 + $0x748] ss:$28 sps:$4 sm:$0xff]  }
  0xc5   :  { %2513 = vmatpush2.bf16.msra.mxu1 %v5693_v29  ;;  %2568 = vmatprep.subr.bf16.mxu0 %v5704_v32  ;;  %v5777_v29 = vld [vmem:[%s8144_s1 + $0x208] ss:$28 sps:$4 sm:$0xff]   ;;  %v5785_v32 = vld [vmem:[%s8144_s1 + $0x1d4] ss:$28 sps:$4 sm:$0xff]  }
  0xc6   :  { %2514 = vmatprep.subr.bf16.mxu1 %v5701_v31  ;;  %v5782_v31 = vld [vmem:[%s8144_s1 + $0x634] ss:$28 sps:$4 sm:$0xff]  }
  0xc8   :  { %2569 = vmatpush1.bf16.msra.mxu0 %v5702_v34  ;;  %v5783_v34 = vld [vmem:[%s8144_s1 + $0x1d0] ss:$28 sps:$4 sm:$0xff]  }
  0xc9   :  { %2515 = vmatpush2.bf16.msra.mxu1 %v5699_v33  ;;  %2570 = vmatprep.subr.bf16.mxu0 %v5707_v35  ;;  %v5780_v33 = vld [vmem:[%s8144_s1 + $0x630] ss:$28 sps:$4 sm:$0xff]   ;;  %v5788_v35 = vld [vmem:[%s8144_s1 + $0x5fc] ss:$28 sps:$4 sm:$0xff]  }
  0xca   :  { %2539 = vmatprep.subr.bf16.mxu1 %v5710_v37  ;;  %v433_v37 = vld [vmem:[%s8147_s2] sm:$0x7f] }
  0xcc   :  { %2517 = vmatmul.mubr.bf16.vlgmr.msra.gmra.mxu1 %v6690_v21  ;;  %2571 = vmatpush1.bf16.msra.mxu0 %v5705_v38  ;;  %v437_v38 = vsub.s32 0, %v7060_v30 }
  0xcd   :  { %2540 = vmatpush1.bf16.msra.mxu1 %v5708_v39  ;;  %2572 = vmatprep.subr.bf16.mxu0 %v5713_v40  ;;  %v5791_v39 = vld [vmem:[%s8144_s1 + $0x89c] ss:$28 sps:$4 sm:$0xff]   ;;  %v441_v40 = vsub.s32 1, %v7060_v30 }
  0xce   :  { %2557 = vmatprep.mubr.bf16.mxu1 %v6218_v16  ;;  %2607 = vmatprep.subr.bf16.mxu1 %v5716_v41  ;;  %v5786_v41 = vld [vmem:[%s8144_s1 + $0x5f8] ss:$28 sps:$4 sm:$0xff]  }
  0xd0   :  { %2573 = vmatpush1.bf16.msra.mxu0 %v5711_v42  ;;  %v5789_v42 = vld [vmem:[%s8144_s1 + $0x898] ss:$28 sps:$4 sm:$0xff]  }
  0xd1   :  { %2574 = vmatprep.subr.bf16.mxu0 %v5719_v43  ;;  %v438_v43 = vrot.slane %v433_v37, %v437_v38 }
  0xd4   :  { %5081 = vmatmul.mubr.msk.bf16.vlgmr.msra.gmra.mxu1 %vm2234_vm0, %v6508_v19  ;;  %2575 = vmatpush1.bf16.msra.mxu0 %v5717_v45  ;;  %v5797_v45 = vld [vmem:[%s8144_s1 + $0x864] ss:$28 sps:$4 sm:$0xff]  }
  0xd5   :  { %2608 = vmatpush1.bf16.msra.mxu1 %v5714_v44  ;;  %2576 = vmatprep.subr.bf16.mxu0 %v5725_v47  ;;  %v5794_v44 = vld [vmem:[%s8144_s1 + $0x5c4] ss:$28 sps:$4 sm:$0xff]  }
  0xd6   :  { %2609 = vmatprep.subr.bf16.mxu1 %v5722_v46  ;;  %2639 = vmatprep.mubr.bf16.mxu1 %v6416_v52  ;;  %v442_v46 = vrot.slane %v433_v37, %v441_v40  ;;  %v5835_v37 = vld [vmem:[%s8144_s1 + $0xf8] ss:$28 sps:$4 sm:$0xff]  }
  0xd8   :  { %2577 = vmatpush1.bf16.msra.mxu0 %v5723_v50  ;;  %v5792_v50 = vld [vmem:[%s8144_s1 + $0x5c0] ss:$28 sps:$4 sm:$0xff]  }
  0xd9   :  { %2610 = vmatpush1.bf16.msra.mxu1 %v5720_v48  ;;  %2578 = vmatprep.subr.bf16.mxu0 %v5731_v53 }
  0xda   :  { %2611 = vmatprep.subr.bf16.mxu1 %v5728_v51  ;;  %v5795_v51 = vld [vmem:[%s8144_s1 + $0x860] ss:$28 sps:$4 sm:$0xff]  }
  0xdc   :  { %2579 = vmatpush1.bf16.msra.mxu0 %v5729_v55 }
  0xdd   :  { %2612 = vmatpush1.bf16.msra.mxu1 %v5726_v54  ;;  %2580 = vmatprep.subr.bf16.mxu0 %v5737_v57  ;;  %v5800_v54 = vld [vmem:[%s8144_s1 + $0x58c] ss:$28 sps:$4 sm:$0xff]  }
  0xde   :  { %2613 = vmatprep.subr.bf16.mxu1 %v5734_v56  ;;  %v5803_v57 = vld [vmem:[%s8144_s1 + $0x82c] ss:$28 sps:$4 sm:$0xff]  }
  0xe0   :  { %2581 = vmatpush1.bf16.msra.mxu0 %v5735_v59 }
  0xe1   :  { %2614 = vmatpush1.bf16.msra.mxu1 %v5732_v58  ;;  %2582 = vmatprep.subr.bf16.mxu0 %v5743_v61 }
  0xe2   :  { %2615 = vmatprep.subr.bf16.mxu1 %v5740_v60 }
  0xe4   :  { %2583 = vmatpush2.bf16.msra.mxu0 %v5741_v63  ;;  %v5801_v63 = vld [vmem:[%s8144_s1 + $0x828] ss:$28 sps:$4 sm:$0xff]  }
  0xe5   :  { %2616 = vmatpush1.bf16.msra.mxu1 %v5738_v62  ;;  %2584 = vmatprep.subr.bf16.mxu0 %v5749_v1  ;;  %v5798_v62 = vld [vmem:[%s8144_s1 + $0x588] ss:$28 sps:$4 sm:$0xff]   ;;  %v5806_v1 = vld [vmem:[%s8144_s1 + $0x554] ss:$28 sps:$4 sm:$0xff]  }
  0xe6   :  { %2617 = vmatprep.subr.bf16.mxu1 %v5746_v0 }
  0xe8   :  { %2585 = vmatpush2.bf16.msra.mxu0 %v5747_v3 }
  0xe9   :  { %2618 = vmatpush1.bf16.msra.mxu1 %v5744_v2  ;;  %2586 = vmatprep.subr.bf16.mxu0 %v5755_v5 }
  0xea   :  { %2619 = vmatprep.subr.bf16.mxu1 %v5752_v4  ;;  %v5809_v4 = vld [vmem:[%s8144_s1 + $0x7f4] ss:$28 sps:$4 sm:$0xff]  }
  0xec   :  { %2587 = vmatpush2.bf16.msra.mxu0 %v5753_v7  ;;  %v5807_v7 = vld [vmem:[%s8144_s1 + $0x7f0] ss:$28 sps:$4 sm:$0xff]  }
  0xed   :  { %2620 = vmatpush1.bf16.msra.mxu1 %v5750_v6  ;;  %2588 = vmatprep.subr.bf16.mxu0 %v5761_v11  ;;  %v5804_v6 = vld [vmem:[%s8144_s1 + $0x550] ss:$28 sps:$4 sm:$0xff]  }
  0xee   :  { %2621 = vmatprep.subr.bf16.mxu1 %v5758_v10  ;;  %v5812_v10 = vld [vmem:[%s8144_s1 + $0x7bc] ss:$28 sps:$4 sm:$0xff]  }
  0xf0   :  { %2589 = vmatpush2.bf16.msra.mxu0 %v5759_v13 }
  0xf1   :  { %2622 = vmatpush1.bf16.msra.mxu1 %v5756_v12  ;;  %2590 = vmatprep.subr.bf16.mxu0 %v5767_v15  ;;  %v5815_v12 = vld [vmem:[%s8144_s1 + $0xa94] ss:$28 sps:$4 sm:$0xff]  }
  0xf2   :  { %2623 = vmatprep.subr.bf16.mxu1 %v5764_v14  ;;  %v5810_v14 = vld [vmem:[%s8144_s1 + $0x7b8] ss:$28 sps:$4 sm:$0xff]   ;;  %v5813_v15 = vld [vmem:[%s8144_s1 + $0xa90] ss:$28 sps:$4 sm:$0xff]  }
  0xf4   :  { %2591 = vmatpush2.bf16.msra.mxu0 %v5765_v18  ;;  %v5818_v18 = vld [vmem:[%s8144_s1 + $0x784] ss:$28 sps:$4 sm:$0xff]  }
  0xf5   :  { %2624 = vmatpush2.bf16.msra.mxu1 %v5762_v17  ;;  %2592 = vmatprep.subr.bf16.mxu0 %v5773_v22  ;;  %v5816_v22 = vld [vmem:[%s8144_s1 + $0x780] ss:$28 sps:$4 sm:$0xff]  }
  0xf6   :  { %2625 = vmatprep.subr.bf16.mxu1 %v5770_v20  ;;  %v5819_v20 = vld [vmem:[%s8144_s1 + $0x360] ss:$28 sps:$4 sm:$0xff]  }
  0xf8   :  { %2593 = vmatpush2.bf16.msra.mxu0 %v5771_v24  ;;  %v5820_v24 = vld [vmem:[%s8144_s1 + $0x1a0] ss:$28 sps:$4 sm:$0xff]  }
  0xf9   :  { %2626 = vmatpush2.bf16.msra.mxu1 %v5768_v23  ;;  %2594 = vmatprep.subr.bf16.mxu0 %v5779_v27  ;;  %v5823_v23 = vld [vmem:[%s8144_s1 + $0x74c] ss:$28 sps:$4 sm:$0xff]   ;;  %v5828_v27 = vld [vmem:[%s8144_s1 + $0x714] ss:$28 sps:$4 sm:$0xff]  }
  0xfa   :  { %2627 = vmatprep.subr.bf16.mxu1 %v5776_v26  ;;  %v5824_v26 = vld [vmem:[%s8144_s1 + $0x328] ss:$28 sps:$4 sm:$0xff]  }
  0xfc   :  { %2595 = vmatpush2.bf16.msra.mxu0 %v5777_v29  ;;  %v5826_v29 = vld [vmem:[%s8144_s1 + $0x710] ss:$28 sps:$4 sm:$0xff]  }
  0xfd   :  { %2628 = vmatpush2.bf16.msra.mxu1 %v5774_v28  ;;  %2596 = vmatprep.subr.bf16.mxu0 %v5785_v32  ;;  %v5825_v28 = vld [vmem:[%s8144_s1 + $0x168] ss:$28 sps:$4 sm:$0xff]   ;;  %v5833_v32 = vld [vmem:[%s8144_s1 + $0xa5c] ss:$28 sps:$4 sm:$0xff]  }
  0xfe   :  { %2629 = vmatprep.subr.bf16.mxu1 %v5782_v31  ;;  %v5829_v31 = vld [vmem:[%s8144_s1 + $0x2f0] ss:$28 sps:$4 sm:$0xff]  }
 0x100   :  { %2597 = vmatpush2.bf16.msra.mxu0 %v5783_v34  ;;  %v5831_v34 = vld [vmem:[%s8144_s1 + $0xa58] ss:$28 sps:$4 sm:$0xff]  }
 0x101   :  { %2630 = vmatpush2.bf16.msra.mxu1 %v5780_v33  ;;  %2648 = vmatprep.subr.bf16.mxu0 %v5791_v39  ;;  %v5830_v33 = vld [vmem:[%s8144_s1 + $0x130] ss:$28 sps:$4 sm:$0xff]   ;;  %v5836_v39 = vld [vmem:[%s8144_s1 + $0xa20] ss:$28 sps:$4 sm:$0xff]  }
 0x102   :  { %2631 = vmatprep.subr.bf16.mxu1 %v5788_v35  ;;  %v5834_v35 = vld [vmem:[%s8144_s1 + $0x2b8] ss:$28 sps:$4 sm:$0xff]  }
 0x103   :  { %v2272_v47 = vpop.f32.mrf.mxu0  ;;  %2599 = vmatmul.mubr.bf16.vlgmr.msra.gmra.mxu0 %v6477_v8 }
 0x104   :  { %v2313_v48 = vpop.f32.mrf.mxu1  ;;  %v2273_v53 = vadd.f32 %v2272_v47, %v438_v43  ;;  %2649 = vmatpush1.bf16.msra.mxu0 %v5789_v42  ;;  %2680 = vmatprep.mubr.bf16.mxu0 %v6561_v36  ;;  %v5843_v42 = vld [vmem:[%s8144_s1 + $0x9ec] ss:$28 sps:$4 sm:$0xff]   ;;  %v5840_v43 = vld [vmem:[%s8144_s1 + $0xc0] ss:$28 sps:$4 sm:$0xff]  }
 0x105   :  { %2632 = vmatpush2.bf16.msra.mxu1 %v5786_v41  ;;  %v2274_v55 = vpop.f32.mrf.mxu0  ;;  %2650 = vmatprep.subr.bf16.mxu0 %v5797_v45  ;;  %v5839_v41 = vld [vmem:[%s8144_s1 + $0x280] ss:$28 sps:$4 sm:$0xff]   ;;  %v5844_v45 = vld [vmem:[%s8144_s1 + $0x248] ss:$28 sps:$4 sm:$0xff]  }
 0x106   :  { %2633 = vmatprep.subr.bf16.mxu1 %v5794_v44  ;;  %v2315_v56 = vpop.f32.mrf.mxu1  ;;  %v2275_v58 = vadd.f32 %v2274_v55, %v442_v46  ;;  %v7114_v59 = vadd.f32 %v2313_v48, %v2273_v53  ;;  %v5841_v44 = vld [vmem:[%s8144_s1 + $0x9e8] ss:$28 sps:$4 sm:$0xff]   ;;  %v5848_v46 = vld [vmem:[%s8144_s1 + $0x9b4] ss:$28 sps:$4 sm:$0xff]  }
 0x107   :  { %v2276_v60 = vpop.f32.mrf.mxu0  ;;  %v5845_v47 = vld [vmem:[%s8144_s1 + $0x88] ss:$28 sps:$4 sm:$0xff]   ;;  %v5846_v48 = vld [vmem:[%s8144_s1 + $0x9b0] ss:$28 sps:$4 sm:$0xff]   ;;  %v5854_v55 = vld [vmem:[%s8144_s1 + $0x1d8] ss:$28 sps:$4 sm:$0xff]  }
 0x108   :  { %v2317_v61 = vpop.f32.mrf.mxu1  ;;  %v7123_v0 = vadd.f32 %v2315_v56, %v2275_v58  ;;  %2651 = vmatpush1.bf16.msra.mxu0 %v5795_v51  ;;  %v5853_v51 = vld [vmem:[%s8144_s1 + $0x97c] ss:$28 sps:$4 sm:$0xff]   ;;  %v5850_v53 = vld [vmem:[%s8144_s1 + $0x50] ss:$28 sps:$4 sm:$0xff]   ;;  %v5858_v56 = vld [vmem:[%s8144_s1 + $0x944] ss:$28 sps:$4 sm:$0xff]  }
 0x109   :  { %2634 = vmatpush2.bf16.msra.mxu1 %v5792_v50  ;;  %v2277_v2 = vpop.f32.mrf.mxu0  ;;  %2652 = vmatprep.subr.bf16.mxu0 %v5803_v57  ;;  %v5849_v50 = vld [vmem:[%s8144_s1 + $0x210] ss:$28 sps:$4 sm:$0xff]   ;;  %v5855_v57 = vld [vmem:[%s8144_s1 + $0x18] ss:$28 sps:$4 sm:$0xff]   ;;  %v5856_v58 = vld [vmem:[%s8144_s1 + $0x940] ss:$28 sps:$4 sm:$0xff]  }
 0x10a   :  { %2635 = vmatprep.subr.bf16.mxu1 %v5800_v54  ;;  %v2318_v3 = vpop.f32.mrf.mxu1  ;;  %v5851_v54 = vld [vmem:[%s8144_s1 + $0x978] ss:$28 sps:$4 sm:$0xff]   ;;  %v5859_v60 = vld [vmem:[%s8144_s1 + $0x6e0] ss:$28 sps:$4 sm:$0xff]   ;;  %v5863_v61 = vld [vmem:[%s8144_s1 + $0x90c] ss:$28 sps:$4 sm:$0xff]  }
 0x10b   :  { %v5868_v2 = vld [vmem:[%s8144_s1 + $0x8d4] ss:$28 sps:$4 sm:$0xff]   ;;  %v5865_v3 = vld [vmem:[%s8144_s1 + $0x4e8] ss:$28 sps:$4 sm:$0xff]  }
 0x10c   :  { %v7131_v5 = vpop.f32.mrf.mxu1  ;;  %2653 = vmatpush1.bf16.msra.mxu0 %v5801_v63  ;;  %v5861_v63 = vld [vmem:[%s8144_s1 + $0x908] ss:$28 sps:$4 sm:$0xff]  }
 0x10d   :  { %2636 = vmatpush2.bf16.msra.mxu1 %v5798_v62  ;;  %2654 = vmatprep.subr.bf16.mxu0 %v5809_v4  ;;  %v5860_v62 = vld [vmem:[%s8144_s1 + $0x520] ss:$28 sps:$4 sm:$0xff]   ;;  %v5866_v4 = vld [vmem:[%s8144_s1 + $0x8d0] ss:$28 sps:$4 sm:$0xff]  }
 0x10e   :  { %2637 = vmatprep.subr.bf16.mxu1 %v5806_v1  ;;  %v7142_v11 = vpop.f32.mrf.mxu1  ;;  %v5864_v1 = vld [vmem:[%s8144_s1 + $0x6a8] ss:$28 sps:$4 sm:$0xff]  }
 0x110   :  { %v2399_v13 = vpop.f32.mrf.mxu1  ;;  %2655 = vmatpush1.bf16.msra.mxu0 %v5807_v7  ;;  %v5871_v7 = vld [vmem:[%s8144_s1 + $0xa60] ss:$28 sps:$4 sm:$0xff]  }
 0x111   :  { %2638 = vmatpush2.bf16.msra.mxu1 %v5804_v6  ;;  %2656 = vmatprep.subr.bf16.mxu0 %v5812_v10  ;;  %v5869_v6 = vld [vmem:[%s8144_s1 + $0x670] ss:$28 sps:$4 sm:$0xff]   ;;  %v5875_v13 = vld [vmem:[%s8144_s1 + $0xa28] ss:$28 sps:$4 sm:$0xff]  }
 0x112   :  { %v2400_v17 = vpop.f32.mrf.mxu1  ;;  %2703 = vmatprep.subr.bf16.mxu1 %v5815_v12  ;;  %v5870_v10 = vld [vmem:[%s8144_s1 + $0x4b0] ss:$28 sps:$4 sm:$0xff]   ;;  %v5872_v12 = vld [vmem:[%s8144_s1 + $0x638] ss:$28 sps:$4 sm:$0xff]  }
 0x113   :  { %v5876_v17 = vld [vmem:[%s8144_s1 + $0x600] ss:$28 sps:$4 sm:$0xff]  }
 0x114   :  { %2640 = vmatmul.mubr.bf16.vlgmr.msra.gmra.mxu1 %v6479_v9  ;;  %2657 = vmatpush1.bf16.msra.mxu0 %v5810_v14  ;;  %v5874_v14 = vld [vmem:[%s8144_s1 + $0x478] ss:$28 sps:$4 sm:$0xff]  }
 0x115   :  { %2704 = vmatpush1.bf16.msra.mxu1 %v5813_v15  ;;  %2658 = vmatprep.subr.bf16.mxu0 %v5818_v18  ;;  %v5879_v18 = vld [vmem:[%s8144_s1 + $0x9f0] ss:$28 sps:$4 sm:$0xff]  }
 0x116   :  { %2721 = vmatprep.mubr.bf16.mxu1 %v6218_v16  ;;  %5309 = vmatprep.subr.bf16.mxu1 %v5819_v20 }
 0x118   :  { %2659 = vmatpush1.bf16.msra.mxu0 %v5816_v22 }
 0x119   :  { %2660 = vmatprep.subr.bf16.mxu0 %v5823_v23 }
 0x11c   :  { %5082 = vmatmul.mubr.msk.bf16.vlgmr.msra.gmra.mxu1 %vm2234_vm0, %v6508_v19  ;;  %2661 = vmatpush1.bf16.msra.mxu0 %v5821_v25  ;;  %v5878_v25 = vld [vmem:[%s8144_s1 + $0x440] ss:$28 sps:$4 sm:$0xff]  }
 0x11d   :  { %5310 = vmatpush3.bf16.msra.mxu1 %v5820_v24  ;;  %2662 = vmatprep.subr.bf16.mxu0 %v5828_v27 }
 0x11e   :  { %5311 = vmatprep.subr.bf16.mxu1 %v5824_v26  ;;  %2762 = vmatprep.mubr.bf16.mxu1 %v6408_v49  ;;  %v5838_v49 = vld [vmem:[%s8144_s1 + $0xa24] ss:$28 sps:$4 sm:$0xff]   ;;  %v5881_v26 = vld [vmem:[%s8144_s1 + $0x830] ss:$28 sps:$4 sm:$0xff]  }
 0x120   :  { %2663 = vmatpush1.bf16.msra.mxu0 %v5826_v29 }
 0x121   :  { %5312 = vmatpush3.bf16.msra.mxu1 %v5825_v28  ;;  %2664 = vmatprep.subr.bf16.mxu0 %v5833_v32  ;;  %v5883_v28 = vld [vmem:[%s8144_s1 + $0x9b8] ss:$28 sps:$4 sm:$0xff]   ;;  %v5887_v32 = vld [vmem:[%s8144_s1 + $0x980] ss:$28 sps:$4 sm:$0xff]  }
 0x122   :  { %5313 = vmatprep.subr.bf16.mxu1 %v5829_v31  ;;  %v5884_v31 = vld [vmem:[%s8144_s1 + $0x590] ss:$28 sps:$4 sm:$0xff]  }
 0x124   :  { %2665 = vmatpush2.bf16.msra.mxu0 %v5831_v34 }
 0x125   :  { %5314 = vmatpush3.bf16.msra.mxu1 %v5830_v33  ;;  %2666 = vmatprep.subr.bf16.mxu0 %v5838_v49  ;;  %v5889_v49 = vld [vmem:[%s8144_s1 + $0x7c0] ss:$28 sps:$4 sm:$0xff]  }
 0x126   :  { %5315 = vmatprep.subr.bf16.mxu1 %v5834_v35  ;;  %v5886_v35 = vld [vmem:[%s8144_s1 + $0x3d0] ss:$28 sps:$4 sm:$0xff]  }
 0x128   :  { %2667 = vmatpush2.bf16.msra.mxu0 %v5836_v39  ;;  %v5888_v39 = vld [vmem:[%s8144_s1 + $0x558] ss:$28 sps:$4 sm:$0xff]  }
 0x129   :  { %5316 = vmatpush3.bf16.msra.mxu1 %v5835_v37  ;;  %2668 = vmatprep.subr.bf16.mxu0 %v5843_v42  ;;  %v5890_v42 = vld [vmem:[%s8144_s1 + $0x398] ss:$28 sps:$4 sm:$0xff]  }
 0x12a   :  { %5317 = vmatprep.subr.bf16.mxu1 %v5839_v41  ;;  %v5891_v41 = vld [vmem:[%s8144_s1 + $0x948] ss:$28 sps:$4 sm:$0xff]  }
 0x12c   :  { %2669 = vmatpush2.bf16.msra.mxu0 %v5841_v44  ;;  %v5893_v44 = vld [vmem:[%s8144_s1 + $0x910] ss:$28 sps:$4 sm:$0xff]  }
 0x12d   :  { %5318 = vmatpush3.bf16.msra.mxu1 %v5840_v43  ;;  %2670 = vmatprep.subr.bf16.mxu0 %v5848_v46  ;;  %v5892_v43 = vld [vmem:[%s8144_s1 + $0x788] ss:$28 sps:$4 sm:$0xff]   ;;  %v5895_v46 = vld [vmem:[%s8144_s1 + $0xa98] ss:$28 sps:$4 sm:$0xff]  }
 0x12e   :  { %5319 = vmatprep.subr.bf16.mxu1 %v5844_v45  ;;  %v5894_v45 = vld [vmem:[%s8144_s1 + $0x750] ss:$28 sps:$4 sm:$0xff]  }
 0x130   :  { %2671 = vmatpush2.bf16.msra.mxu0 %v5846_v48  ;;  %v5896_v48 = vld [vmem:[%s8144_s1 + $0x8d8] ss:$28 sps:$4 sm:$0xff]  }
 0x131   :  { %5320 = vmatpush3.bf16.msra.mxu1 %v5845_v47  ;;  %2672 = vmatprep.subr.bf16.mxu0 %v5853_v51  ;;  %v6219_v47 = vmov 0.0   ;;  %v5900_v51 = vld [vmem:[%s8144_s1 + $0x718] ss:$28 sps:$4 sm:$0xff]  }
 0x132   :  { %5321 = vmatprep.subr.bf16.mxu1 %v5849_v50  ;;  %v5899_v50 = vld [vmem:[%s8146_s3 + $0xe4] ss:$16 sps:$4 sm:$0xff]  }
 0x134   :  { %2673 = vmatpush2.bf16.msra.mxu0 %v5851_v54 }
 0x135   :  { %5322 = vmatpush3.bf16.msra.mxu1 %v5850_v53  ;;  %2674 = vmatprep.subr.bf16.mxu0 %v5858_v56  ;;  %v5906_v53 = vld [vmem:[%s8146_s3 + $0x2e4] ss:$16 sps:$4 sm:$0xff]   ;;  %v5904_v56 = vld [vmem:[%s8146_s3 + $0x2e0] ss:$16 sps:$4 sm:$0xff]  }
 0x136   :  { %5323 = vmatprep.subr.bf16.mxu1 %v5854_v55  ;;  %v5897_v55 = vld [vmem:[%s8146_s3 + $0xe0] ss:$16 sps:$4 sm:$0xff]  }
 0x138   :  { %2675 = vmatpush2.bf16.msra.mxu0 %v5856_v58  ;;  %v5912_v58 = vld [vmem:[%s8146_s3 + $0x2c4] ss:$16 sps:$4 sm:$0xff]  }
 0x139   :  { %5324 = vmatpush3.bf16.msra.mxu1 %v5855_v57  ;;  %2676 = vmatprep.subr.bf16.mxu0 %v5863_v61  ;;  %v5909_v61 = vld [vmem:[%s8146_s3 + $0xa4] ss:$16 sps:$4 sm:$0xff]  }
 0x13a   :  { %5331 = vmatprep.subr.bf16.mxu1 %v5859_v60  ;;  %v5901_v60 = vld [vmem:[%s8146_s3 + $0xc0] ss:$16 sps:$4 sm:$0xff]  }
 0x13c   :  { %2763 = vmatmul.mubr.bf16.vlgmr.msra.gmra.mxu1 %v6477_v8  ;;  %2677 = vmatpush2.bf16.msra.mxu0 %v5861_v63  ;;  %v5873_v8 = vld [vmem:[%s8144_s1 + $0x8a0] ss:$28 sps:$4 sm:$0xff]   ;;  %v5915_v63 = vld [vmem:[%s8146_s3 + $0x84] ss:$16 sps:$4 sm:$0xff]  }
 0x13d   :  { %5332 = vmatpush3.bf16.msra.mxu1 %v5860_v62  ;;  %2678 = vmatprep.subr.bf16.mxu0 %v5868_v2  ;;  %v5910_v62 = vld [vmem:[%s8146_s3 + $0x2c0] ss:$16 sps:$4 sm:$0xff]   ;;  %v5924_v2 = vld [vmem:[%s8146_s3 + $0x284] ss:$16 sps:$4 sm:$0xff]  }
 0x13e   :  { %5333 = vmatprep.subr.bf16.mxu1 %v5864_v1  ;;  %2802 = vmatprep.mubr.bf16.mxu1 %v6416_v52  ;;  %v5877_v52 = vld [vmem:[%s8144_s1 + $0x868] ss:$28 sps:$4 sm:$0xff]   ;;  %v5916_v1 = vld [vmem:[%s8146_s3 + $0x2a0] ss:$16 sps:$4 sm:$0xff]  }
 0x140   :  { %2679 = vmatpush2.bf16.msra.mxu0 %v5866_v4  ;;  %v5921_v4 = vld [vmem:[%s8146_s3 + $0x64] ss:$16 sps:$4 sm:$0xff]  }
 0x141   :  { %5334 = vmatpush3.bf16.msra.mxu1 %v5865_v3  ;;  %5353 = vmatprep.subr.bf16.mxu0 %v5871_v7  ;;  %v5913_v3 = vld [vmem:[%s8146_s3 + $0x80] ss:$16 sps:$4 sm:$0xff]   ;;  %v5930_v7 = vld [vmem:[%s8146_s3 + $0x264] ss:$16 sps:$4 sm:$0xff]  }
 0x142   :  { %5335 = vmatprep.subr.bf16.mxu1 %v5869_v6  ;;  %v5922_v6 = vld [vmem:[%s8146_s3 + $0x280] ss:$16 sps:$4 sm:$0xff]  }
 0x143   :  { %v2354_v15 = vpop.f32.mrf.mxu0  ;;  %2681 = vmatmul.mubr.bf16.vlgmr.msra.gmra.mxu0 %v6690_v21 }
 0x144   :  { %v2355_v20 = vadd.f32 %v2354_v15, %v7114_v59  ;;  %5354 = vmatpush3.bf16.msra.mxu0 %v5873_v8  ;;  %2842 = vmatprep.mubr.bf16.mxu0 %v6561_v36  ;;  %v5882_v36 = vld [vmem:[%s8144_s1 + $0x408] ss:$28 sps:$4 sm:$0xff]   ;;  %v5934_v15 = vld [vmem:[%s8146_s3 + $0x240] ss:$16 sps:$4 sm:$0xff]  }
 0x145   :  { %5336 = vmatpush3.bf16.msra.mxu1 %v5870_v10  ;;  %v2356_v22 = vpop.f32.mrf.mxu0  ;;  %5355 = vmatprep.subr.bf16.mxu0 %v5875_v13  ;;  %v5919_v10 = vld [vmem:[%s8146_s3 + $0x60] ss:$16 sps:$4 sm:$0xff]   ;;  %v5927_v8 = vld [vmem:[%s8146_s3 + $0x44] ss:$16 sps:$4 sm:$0xff]  }
 0x146   :  { %5337 = vmatprep.subr.bf16.mxu1 %v5872_v12  ;;  %v7319_v23 = vadd.f32 %v7131_v5, %v2355_v20  ;;  %v2357_v24 = vadd.f32 %v2356_v22, %v7123_v0  ;;  %v5880_v0 = vld [vmem:[%s8144_s1 + $0x5c8] ss:$28 sps:$4 sm:$0xff]   ;;  %v5928_v12 = vld [vmem:[%s8146_s3 + $0x260] ss:$16 sps:$4 sm:$0xff]  }
 0x147   :  { %v2358_v59 = vpop.f32.mrf.mxu0  ;;  %v5936_v13 = vld [vmem:[%s8146_s3 + $0x244] ss:$16 sps:$4 sm:$0xff]   ;;  %v5940_v22 = vld [vmem:[%s8146_s3 + $0x220] ss:$16 sps:$4 sm:$0xff]  }
 0x148   :  { %v2398_v27 = vadd.f32 %v7142_v11, %v2357_v24  ;;  %5356 = vmatpush3.bf16.msra.mxu0 %v5877_v52  ;;  %v5885_v11 = vld [vmem:[%s8144_s1 + $0x7f8] ss:$28 sps:$4 sm:$0xff]   ;;  %v5946_v59 = vld [vmem:[%s8146_s3 + $0x200] ss:$16 sps:$4 sm:$0xff]  }
 0x149   :  { %5338 = vmatpush3.bf16.msra.mxu1 %v5874_v14  ;;  %v2359_v5 = vpop.f32.mrf.mxu0  ;;  %5357 = vmatprep.subr.bf16.mxu0 %v5879_v18  ;;  %v5925_v14 = vld [vmem:[%s8146_s3 + $0x40] ss:$16 sps:$4 sm:$0xff]   ;;  %v5933_v52 = vld [vmem:[%s8146_s3 + $0x24] ss:$16 sps:$4 sm:$0xff]  }
 0x14a   :  { %5339 = vmatprep.subr.bf16.mxu1 %v5876_v17  ;;  %v2891_v54 = vmax.f32 %v2398_v27, 0.0  ;;  %v5942_v17 = vld [vmem:[%s8146_s3 + $0x224] ss:$16 sps:$4 sm:$0xff]   ;;  %v5931_v18 = vld [vmem:[%s8146_s3 + $0x20] ss:$16 sps:$4 sm:$0xff]  }
 0x14b   :  { %v5939_v20 = vld [vmem:[%s8146_s3 + $0x4] ss:$16 sps:$4 sm:$0xff]   ;;  %v5943_v5 = vld [vmem:[%s8146_s3 + $0x1e0] ss:$16 sps:$4 sm:$0xff]  }
 0x14c   :  { %v7342_v29 = vpop.f32.mrf.mxu1  ;;  %5358 = vmatpush3.bf16.msra.mxu0 %v5881_v26  ;;  %v7401_v57 = vpack.c.bf16 %v2891_v54, %v2891_v54  ;;  %v5948_v24 = vld [vmem:[%s8146_s3 + $0x204] ss:$16 sps:$4 sm:$0xff]  }
 0x14d   :  { %5340 = vmatpush3.bf16.msra.mxu1 %v5878_v25  ;;  %5359 = vmatprep.subr.bf16.mxu0 %v5883_v28  ;;  %v5937_v25 = vld [vmem:[%s8146_s3] ss:$16 sps:$4 sm:$0xff]   ;;  %v5945_v26 = vld [vmem:[%s8146_s3 + $0x1e4] ss:$16 sps:$4 sm:$0xff]  }
 0x14e   :  { %5341 = vmatprep.subr.bf16.mxu1 %v5880_v0  ;;  %v7350_v33 = vpop.f32.mrf.mxu1  ;;  %v5954_v27 = vld [vmem:[%s8146_s3 + $0x3e4] ss:$16 sps:$4 sm:$0xff]   ;;  %v5952_v28 = vld [vmem:[%s8146_s3 + $0x3e0] ss:$16 sps:$4 sm:$0xff]  }
 0x14f   :  { %v5951_v0 = vld [vmem:[%s8146_s3 + $0x1c4] ss:$16 sps:$4 sm:$0xff]  }
 0x150   :  { %v2440_v34 = vpop.f32.mrf.mxu1  ;;  %5360 = vmatpush3.bf16.msra.mxu0 %v5885_v11  ;;  %v5969_v54 = vld [vmem:[%s8146_s3 + $0x164] ss:$16 sps:$4 sm:$0xff]  }
 0x151   :  { %5342 = vmatpush3.bf16.msra.mxu1 %v5882_v36  ;;  %5361 = vmatprep.subr.bf16.mxu0 %v5887_v32  ;;  %v5960_v36 = vld [vmem:[%s8146_s3 + $0x3c4] ss:$16 sps:$4 sm:$0xff]  }
 0x152   :  { %5343 = vmatprep.subr.bf16.mxu1 %v5884_v31  ;;  %v2441_v37 = vpop.f32.mrf.mxu1  ;;  %v5949_v31 = vld [vmem:[%s8146_s3 + $0x1c0] ss:$16 sps:$4 sm:$0xff]   ;;  %v5957_v34 = vld [vmem:[%s8146_s3 + $0x1a4] ss:$16 sps:$4 sm:$0xff]  }
 0x154   :  { %5362 = vmatpush3.bf16.msra.mxu0 %v5889_v49  ;;  %v5966_v49 = vld [vmem:[%s8146_s3 + $0x3a4] ss:$16 sps:$4 sm:$0xff]  }
 0x155   :  { %5344 = vmatpush3.bf16.msra.mxu1 %v5886_v35  ;;  %5363 = vmatprep.subr.bf16.mxu0 %v5891_v41  ;;  %v5958_v35 = vld [vmem:[%s8146_s3 + $0x3c0] ss:$16 sps:$4 sm:$0xff]  }
 0x156   :  { %5345 = vmatprep.subr.bf16.mxu1 %v5888_v39  ;;  %v449_v39 = vsub.s32 3, %v7060_v30  ;;  %v5955_v41 = vld [vmem:[%s8146_s3 + $0x1a0] ss:$16 sps:$4 sm:$0xff]  }
 0x158   :  { %5364 = vmatpush3.bf16.msra.mxu0 %v5892_v43  ;;  %v5963_v43 = vld [vmem:[%s8146_s3 + $0x184] ss:$16 sps:$4 sm:$0xff]  }
 0x159   :  { %5346 = vmatpush3.bf16.msra.mxu1 %v5890_v42  ;;  %5365 = vmatprep.subr.bf16.mxu0 %v5893_v44  ;;  %v5964_v44 = vld [vmem:[%s8146_s3 + $0x3a0] ss:$16 sps:$4 sm:$0xff]  }
 0x15a   :  { %5399 = vmatprep.subr.bf16.mxu1 %v6219_v47 }
 0x15c   :  { %2803 = vmatmul.mubr.bf16.vlgmr.msra.gmra.mxu1 %v6479_v9  ;;  %5366 = vmatpush3.bf16.msra.mxu0 %v5894_v45  ;;  %v5903_v9 = vld [vmem:[%s8146_s3 + $0xc4] ss:$16 sps:$4 sm:$0xff]  }
 0x15d   :  { %5400 = vmatpush3.bf16.msra.mxu1 %v5895_v46  ;;  %5367 = vmatprep.subr.bf16.mxu0 %v5896_v48  ;;  %v5972_v45 = vld [vmem:[%s8146_s3 + $0x384] ss:$16 sps:$4 sm:$0xff]  }
 0x15e   :  { %5401 = vmatprep.mubr.msk.bf16.mxu1 %vm6220_vm1, %v6219_v47  ;;  %4105 = vmatprep.subr.bf16.mxu1 %v5899_v50  ;;  %v445_v47 = vsub.s32 2, %v7060_v30  ;;  %v7535_v48 = vld [vmem:[%s8147_s2] sm:$0x7f] }
 0x15f   :  { %v450_v50 = vrot.slane %v7535_v48, %v449_v39 }
 0x160   :  { %5368 = vmatpush3.bf16.msra.mxu0 %v5900_v51  ;;  %v5961_v51 = vld [vmem:[%s8146_s3 + $0x180] ss:$16 sps:$4 sm:$0xff]  }
 0x161   :  { %4146 = vmatprep.subr.bf16.mxu0 %v5906_v53 }
 0x163   :  { %2843 = vmatmul.mubr.bf16.vlgmr.msra.gmra.mxu0 %v6690_v21  ;;  %v5907_v21 = vld [vmem:[%s8146_s3 + $0xa0] ss:$16 sps:$4 sm:$0xff]  }
 0x164   :  { %5402 = vmatmul.mubr.msk.bf16.vlgmr.msra.gmra.mxu1 %vm2234_vm0, %v6508_v19  ;;  %4147 = vmatpush1.bf16.msra.mxu0 %v5904_v56  ;;  %v5918_v19 = vld [vmem:[%s8146_s3 + $0x2a4] ss:$16 sps:$4 sm:$0xff]  }
 0x165   :  { %4106 = vmatpush1.bf16.msra.mxu1 %v5897_v55  ;;  %4137 = vmatprep.mubr.bf16.mxu1 %v7401_v57  ;;  %v5970_v55 = vld [vmem:[%s8146_s3 + $0x380] ss:$16 sps:$4 sm:$0xff]  }
 0x166   :  { %4107 = vmatprep.subr.bf16.mxu1 %v5903_v9  ;;  %4148 = vmatprep.subr.bf16.mxu0 %v5912_v58  ;;  %v5978_v9 = vld [vmem:[%s8146_s3 + $0x364] ss:$16 sps:$4 sm:$0xff]   ;;  %v446_v58 = vrot.slane %v7535_v48, %v445_v47 }
 0x168   :  { %4149 = vmatpush1.bf16.msra.mxu0 %v5910_v62 }
 0x169   :  { %4108 = vmatpush1.bf16.msra.mxu1 %v5901_v60  ;;  %4150 = vmatprep.subr.bf16.mxu0 %v5918_v19  ;;  %v2439_v60 = vadd.f32 %v7350_v33, %v450_v50  ;;  %v5975_v19 = vld [vmem:[%s8146_s3 + $0x144] ss:$16 sps:$4 sm:$0xff]  }
 0x16a   :  { %4109 = vmatprep.subr.bf16.mxu1 %v5909_v61  ;;  %v5967_v61 = vld [vmem:[%s8146_s3 + $0x160] ss:$16 sps:$4 sm:$0xff]   ;;  %v5984_v33 = vld [vmem:[%s8146_s3 + $0x344] ss:$16 sps:$4 sm:$0xff]  }
 0x16b   :  { %v6014_v50 = vld [vmem:[%s8146_s3 + $0x424] ss:$16 sps:$4 sm:$0xff]  }
 0x16c   :  { %4151 = vmatpush1.bf16.msra.mxu0 %v5916_v1 }
 0x16d   :  { %4110 = vmatpush1.bf16.msra.mxu1 %v5907_v21  ;;  %4152 = vmatprep.subr.bf16.mxu0 %v5924_v2  ;;  %v5976_v21 = vld [vmem:[%s8146_s3 + $0x360] ss:$16 sps:$4 sm:$0xff]   ;;  %v2437_v2 = vadd.f32 %v7342_v29, %v446_v58  ;;  %v5990_v29 = vld [vmem:[%s8146_s3 + $0x324] ss:$16 sps:$4 sm:$0xff]  }
 0x16e   :  { %4111 = vmatprep.subr.bf16.mxu1 %v5915_v63 }
 0x170   :  { %4153 = vmatpush1.bf16.msra.mxu0 %v5922_v6 }
 0x171   :  { %4112 = vmatpush1.bf16.msra.mxu1 %v5913_v3  ;;  %4154 = vmatprep.subr.bf16.mxu0 %v5930_v7  ;;  %v5981_v7 = vld [vmem:[%s8146_s3 + $0x124] ss:$16 sps:$4 sm:$0xff]  }
 0x172   :  { %4113 = vmatprep.subr.bf16.mxu1 %v5921_v4  ;;  %v5973_v4 = vld [vmem:[%s8146_s3 + $0x140] ss:$16 sps:$4 sm:$0xff]  }
 0x174   :  { %4155 = vmatpush1.bf16.msra.mxu0 %v5928_v12 }
 0x175   :  { %4114 = vmatpush1.bf16.msra.mxu1 %v5919_v10  ;;  %4156 = vmatprep.subr.bf16.mxu0 %v5936_v13  ;;  %v5982_v10 = vld [vmem:[%s8146_s3 + $0x340] ss:$16 sps:$4 sm:$0xff]  }
 0x176   :  { %4115 = vmatprep.subr.bf16.mxu1 %v5927_v8 }
 0x178   :  { %4157 = vmatpush1.bf16.msra.mxu0 %v5934_v15  ;;  %v5979_v15 = vld [vmem:[%s8146_s3 + $0x120] ss:$16 sps:$4 sm:$0xff]  }
 0x179   :  { %4116 = vmatpush1.bf16.msra.mxu1 %v5925_v14  ;;  %4158 = vmatprep.subr.bf16.mxu0 %v5942_v17 }
 0x17a   :  { %4117 = vmatprep.subr.bf16.mxu1 %v5933_v52 }
 0x17c   :  { %4159 = vmatpush1.bf16.msra.mxu0 %v5940_v22 }
 0x17d   :  { %4118 = vmatpush1.bf16.msra.mxu1 %v5931_v18  ;;  %4160 = vmatprep.subr.bf16.mxu0 %v5948_v24  ;;  %v5987_v18 = vld [vmem:[%s8146_s3 + $0x104] ss:$16 sps:$4 sm:$0xff]  }
 0x17e   :  { %4119 = vmatprep.subr.bf16.mxu1 %v5939_v20  ;;  %v5988_v20 = vld [vmem:[%s8146_s3 + $0x320] ss:$16 sps:$4 sm:$0xff]  }
 0x180   :  { %4161 = vmatpush1.bf16.msra.mxu0 %v5946_v59  ;;  %v2890_v59 = vmax.f32 %v7319_v23, 0.0  ;;  %v5999_v23 = vld [vmem:[%s8146_s3 + $0x4c4] ss:$16 sps:$4 sm:$0xff]  }
 0x181   :  { %4120 = vmatpush1.bf16.msra.mxu1 %v5937_v25  ;;  %4162 = vmatprep.subr.bf16.mxu0 %v5954_v27  ;;  %v5993_v25 = vld [vmem:[%s8146_s3 + $0x304] ss:$16 sps:$4 sm:$0xff]   ;;  %v5991_v27 = vld [vmem:[%s8146_s3 + $0x300] ss:$16 sps:$4 sm:$0xff]  }
 0x182   :  { %4121 = vmatprep.subr.bf16.mxu1 %v5945_v26  ;;  %v5985_v26 = vld [vmem:[%s8146_s3 + $0x100] ss:$16 sps:$4 sm:$0xff]  }
 0x183   :  { %v2477_v11 = vpop.f32.mrf.mxu0 }
 0x184   :  { %4163 = vmatpush2.bf16.msra.mxu0 %v5952_v28  ;;  %v2478_v8 = vadd.f32 %v2477_v11, %v2437_v2  ;;  %v5994_v28 = vld [vmem:[%s8146_s3 + $0x4e0] ss:$16 sps:$4 sm:$0xff]   ;;  %v6032_v2 = vld [vmem:[%s8146_s3 + $0x564] ss:$16 sps:$4 sm:$0xff]  }
 0x185   :  { %4122 = vmatpush2.bf16.msra.mxu1 %v5943_v5  ;;  %v2479_v32 = vpop.f32.mrf.mxu0  ;;  %4164 = vmatprep.subr.bf16.mxu0 %v5960_v36  ;;  %v5996_v5 = vld [vmem:[%s8146_s3 + $0x4e4] ss:$16 sps:$4 sm:$0xff]   ;;  %v7609_v36 = vpack.c.bf16 %v2890_v59, %v2890_v59 }
 0x186   :  { %4123 = vmatprep.subr.bf16.mxu1 %v5951_v0  ;;  %v2480_v63 = vadd.f32 %v2479_v32, %v2439_v60  ;;  %v6002_v32 = vld [vmem:[%s8146_s3 + $0x4a4] ss:$16 sps:$4 sm:$0xff]   ;;  %v6021_v60 = vld [vmem:[%s8146_s3 + $0x5c0] ss:$16 sps:$4 sm:$0xff]  }
 0x187   :  { %v2481_v37 = vpop.f32.mrf.mxu0 }
 0x188   :  { %4165 = vmatpush2.bf16.msra.mxu0 %v5958_v35  ;;  %v6005_v35 = vld [vmem:[%s8146_s3 + $0x484] ss:$16 sps:$4 sm:$0xff]  }
 0x189   :  { %4124 = vmatpush2.bf16.msra.mxu1 %v5949_v31  ;;  %v2482_v42 = vpop.f32.mrf.mxu0  ;;  %4166 = vmatprep.subr.bf16.mxu0 %v5966_v49  ;;  %v5997_v31 = vld [vmem:[%s8146_s3 + $0x4c0] ss:$16 sps:$4 sm:$0xff]   ;;  %v6008_v37 = vld [vmem:[%s8146_s3 + $0x464] ss:$16 sps:$4 sm:$0xff]  }
 0x18a   :  { %4125 = vmatprep.subr.bf16.mxu1 %v5957_v34  ;;  %v6000_v34 = vld [vmem:[%s8146_s3 + $0x4a0] ss:$16 sps:$4 sm:$0xff]  }
 0x18b   :  { %v6003_v49 = vld [vmem:[%s8146_s3 + $0x480] ss:$16 sps:$4 sm:$0xff]  }
 0x18c   :  { %v2518_v46 = vpop.f32.mrf.mxu1  ;;  %4167 = vmatpush2.bf16.msra.mxu0 %v5964_v44  ;;  %v6063_v42 = vld [vmem:[%s8146_s3 + $0x600] ss:$16 sps:$4 sm:$0xff]  }
 0x18d   :  { %4126 = vmatpush2.bf16.msra.mxu1 %v5955_v41  ;;  %4168 = vmatprep.subr.bf16.mxu0 %v5972_v45  ;;  %v2519_v14 = vadd.f32 %v2518_v46, %v2478_v8  ;;  %v6065_v41 = vld [vmem:[%s8146_s3 + $0x604] ss:$16 sps:$4 sm:$0xff]   ;;  %v6006_v44 = vld [vmem:[%s8146_s3 + $0x460] ss:$16 sps:$4 sm:$0xff]  }
 0x18e   :  { %4127 = vmatprep.subr.bf16.mxu1 %v5963_v43  ;;  %v2520_v53 = vpop.f32.mrf.mxu1  ;;  %v6074_v43 = vld [vmem:[%s8146_s3 + $0xec] ss:$16 sps:$4 sm:$0xff]   ;;  %v6011_v45 = vld [vmem:[%s8146_s3 + $0x444] ss:$16 sps:$4 sm:$0xff]   ;;  %v6009_v46 = vld [vmem:[%s8146_s3 + $0x440] ss:$16 sps:$4 sm:$0xff]  }
 0x18f   :  { %v2521_v3 = vadd.f32 %v2520_v53, %v2480_v63  ;;  %v6017_v53 = vld [vmem:[%s8146_s3 + $0x404] ss:$16 sps:$4 sm:$0xff]  }
 0x190   :  { %v2522_v56 = vpop.f32.mrf.mxu1  ;;  %4169 = vmatpush2.bf16.msra.mxu0 %v5970_v55  ;;  %v6020_v55 = vld [vmem:[%s8146_s3 + $0x5e4] ss:$16 sps:$4 sm:$0xff]  }
 0x191   :  { %4128 = vmatpush2.bf16.msra.mxu1 %v5961_v51  ;;  %4170 = vmatprep.subr.bf16.mxu0 %v5978_v9  ;;  %v6012_v51 = vld [vmem:[%s8146_s3 + $0x420] ss:$16 sps:$4 sm:$0xff]   ;;  %v6023_v56 = vld [vmem:[%s8146_s3 + $0x5c4] ss:$16 sps:$4 sm:$0xff]  }
 0x192   :  { %4129 = vmatprep.subr.bf16.mxu1 %v5969_v54  ;;  %v2523_v62 = vpop.f32.mrf.mxu1  ;;  %v6015_v54 = vld [vmem:[%s8146_s3 + $0x400] ss:$16 sps:$4 sm:$0xff]   ;;  %v6038_v8 = vld [vmem:[%s8146_s3 + $0x524] ss:$16 sps:$4 sm:$0xff]  }
 0x193   :  { %v6018_v9 = vld [vmem:[%s8146_s3 + $0x5e0] ss:$16 sps:$4 sm:$0xff]   ;;  %v6026_v62 = vld [vmem:[%s8146_s3 + $0x5a4] ss:$16 sps:$4 sm:$0xff]  }
 0x194   :  { %v2559_v1 = vpop.f32.mrf.mxu1  ;;  %4171 = vmatpush2.bf16.msra.mxu0 %v5976_v21  ;;  %v6024_v21 = vld [vmem:[%s8146_s3 + $0x5a0] ss:$16 sps:$4 sm:$0xff]  }
 0x195   :  { %4130 = vmatpush2.bf16.msra.mxu1 %v5967_v61  ;;  %4172 = vmatprep.subr.bf16.mxu0 %v5984_v33  ;;  %v2560_v22 = vadd.f32 %v2559_v1, %v2519_v14  ;;  %v6029_v33 = vld [vmem:[%s8146_s3 + $0x584] ss:$16 sps:$4 sm:$0xff]   ;;  %v6027_v1 = vld [vmem:[%s8146_s3 + $0x580] ss:$16 sps:$4 sm:$0xff]  }
 0x196   :  { %4131 = vmatprep.subr.bf16.mxu1 %v5975_v19  ;;  %v2561_v6 = vpop.f32.mrf.mxu1  ;;  %v6041_v14 = vld [vmem:[%s8146_s3 + $0x504] ss:$16 sps:$4 sm:$0xff]  }
 0x197   :  { %v2562_v12 = vadd.f32 %v2561_v6, %v2521_v3  ;;  %v2892_v0 = vmax.f32 %v2560_v22, 0.0  ;;  %v6030_v3 = vld [vmem:[%s8146_s3 + $0x560] ss:$16 sps:$4 sm:$0xff]  }
 0x198   :  { %v2563_v13 = vpop.f32.mrf.mxu1  ;;  %4173 = vmatpush2.bf16.msra.mxu0 %v5982_v10 }
 0x199   :  { %v2893_v52 = vmax.f32 %v2562_v12, 0.0  ;;  %4132 = vmatpush2.bf16.msra.mxu1 %v5973_v4  ;;  %4174 = vmatprep.subr.bf16.mxu0 %v5990_v29  ;;  %v7614_v11 = vpack.c.bf16 %v2892_v0, %v2892_v0  ;;  %v6035_v4 = vld [vmem:[%s8146_s3 + $0x544] ss:$16 sps:$4 sm:$0xff]   ;;  %v6036_v29 = vld [vmem:[%s8146_s3 + $0x520] ss:$16 sps:$4 sm:$0xff]  }
 0x19a   :  { %4133 = vmatprep.subr.bf16.mxu1 %v5981_v7  ;;  %v2564_v17 = vpop.f32.mrf.mxu1  ;;  %v6033_v7 = vld [vmem:[%s8146_s3 + $0x540] ss:$16 sps:$4 sm:$0xff]  }
 0x19b   :  { %v7590_v24 = vpack.c.bf16 %v2893_v52, %v2893_v52 }
 0x19c   :  { %4175 = vmatpush2.bf16.msra.mxu0 %v5988_v20 }
 0x19d   :  { %4134 = vmatpush2.bf16.msra.mxu1 %v5979_v15  ;;  %4178 = vmatprep.mubr.bf16.mxu0 %v7590_v24  ;;  %v6039_v15 = vld [vmem:[%s8146_s3 + $0x500] ss:$16 sps:$4 sm:$0xff]  }
 0x19e   :  { %4135 = vmatprep.subr.bf16.mxu1 %v5987_v18  ;;  %4176 = vmatprep.subr.bf16.mxu0 %v5993_v25  ;;  %v6044_v18 = vld [vmem:[%s8146_s3 + $0x2ec] ss:$16 sps:$4 sm:$0xff]   ;;  %v453_v25 = vsub.s32 4, %v7060_v30 }
 0x1a0   :  { %4177 = vmatpush2.bf16.msra.mxu0 %v5991_v27  ;;  %v454_v27 = vrot.slane %v7535_v48, %v453_v25 }
 0x1a1   :  { %4136 = vmatpush2.bf16.msra.mxu1 %v5985_v26  ;;  %4242 = vmatprep.subr.bf16.mxu0 %v6065_v41  ;;  %v457_v26 = vsub.s32 5, %v7060_v30 }
 0x1a2   :  { %4187 = vmatprep.subr.bf16.mxu1 %v5996_v5 }
 0x1a3   :  { %4179 = vmatmul.mubr.bf16.vlgmr.msra.gmra.mxu0 %v7614_v11  ;;  %v458_v0 = vrot.slane %v7535_v48, %v457_v26  ;;  %v6066_v26 = vld [vmem:[%s8146_s3 + $0x208] ss:$16 sps:$4 sm:$0xff]  }
 0x1a4   :  { %4138 = vmatmul.mubr.bf16.vlgmr.msra.gmra.mxu1 %v7609_v36  ;;  %4260 = vmatprep.mubr.bf16.mxu0 %v6218_v16 }
 0x1a5   :  { %4188 = vmatpush1.bf16.msra.mxu1 %v5994_v28  ;;  %4243 = vmatpush1.bf16.msra.mxu0 %v6063_v42 }
 0x1a6   :  { %4189 = vmatprep.subr.bf16.mxu1 %v5999_v23  ;;  %4269 = vmatprep.subr.bf16.mxu0 %v6074_v43 }
 0x1a9   :  { %4190 = vmatpush1.bf16.msra.mxu1 %v5997_v31 }
 0x1aa   :  { %4191 = vmatprep.subr.bf16.mxu1 %v6002_v32 }
 0x1ad   :  { %4192 = vmatpush1.bf16.msra.mxu1 %v6000_v34 }
 0x1ae   :  { %4193 = vmatprep.subr.bf16.mxu1 %v6005_v35 }
 0x1b1   :  { %4194 = vmatpush1.bf16.msra.mxu1 %v6003_v49 }
 0x1b2   :  { %4195 = vmatprep.subr.bf16.mxu1 %v6008_v37 }
 0x1b5   :  { %4196 = vmatpush1.bf16.msra.mxu1 %v6006_v44 }
 0x1b6   :  { %4197 = vmatprep.subr.bf16.mxu1 %v6011_v45 }
 0x1b9   :  { %4198 = vmatpush1.bf16.msra.mxu1 %v6009_v46 }
 0x1ba   :  { %4199 = vmatprep.subr.bf16.mxu1 %v6014_v50 }
 0x1bd   :  { %4200 = vmatpush1.bf16.msra.mxu1 %v6012_v51 }
 0x1be   :  { %4201 = vmatprep.subr.bf16.mxu1 %v6017_v53 }
 0x1c1   :  { %4202 = vmatpush1.bf16.msra.mxu1 %v6015_v54  ;;  %v6042_v54 = vld [vmem:[%s8146_s3 + $0x2e8] ss:$16 sps:$4 sm:$0xff]  }
 0x1c2   :  { %4203 = vmatprep.subr.bf16.mxu1 %v6020_v55 }
 0x1c3   :  { %v2600_v58 = vpop.f32.mrf.mxu0 }
 0x1c4   :  { %v2601_v23 = vadd.f32 %v2600_v58, %v454_v27  ;;  %v6050_v58 = vld [vmem:[%s8146_s3 + $0x2ac] ss:$16 sps:$4 sm:$0xff]  }
 0x1c5   :  { %4204 = vmatpush2.bf16.msra.mxu1 %v6018_v9  ;;  %v2602_v61 = vpop.f32.mrf.mxu0  ;;  %v6047_v9 = vld [vmem:[%s8146_s3 + $0x2cc] ss:$16 sps:$4 sm:$0xff]  }
 0x1c6   :  { %4205 = vmatprep.subr.bf16.mxu1 %v6023_v56  ;;  %v2603_v32 = vadd.f32 %v2602_v61, %v458_v0  ;;  %v6045_v56 = vld [vmem:[%s8146_s3 + $0x2c8] ss:$16 sps:$4 sm:$0xff]   ;;  %v6053_v61 = vld [vmem:[%s8146_s3 + $0x28c] ss:$16 sps:$4 sm:$0xff]  }
 0x1c7   :  { %v2604_v19 = vpop.f32.mrf.mxu0 }
 0x1c9   :  { %4206 = vmatpush2.bf16.msra.mxu1 %v6021_v60  ;;  %v2605_v63 = vpop.f32.mrf.mxu0  ;;  %v6048_v60 = vld [vmem:[%s8146_s3 + $0x2a8] ss:$16 sps:$4 sm:$0xff]  }
 0x1ca   :  { %4207 = vmatprep.subr.bf16.mxu1 %v6026_v62  ;;  %v6056_v62 = vld [vmem:[%s8146_s3 + $0x26c] ss:$16 sps:$4 sm:$0xff]   ;;  %v6054_v63 = vld [vmem:[%s8146_s3 + $0x268] ss:$16 sps:$4 sm:$0xff]  }
 0x1cd   :  { %4208 = vmatpush2.bf16.msra.mxu1 %v6024_v21  ;;  %v461_v21 = vsub.s32 6, %v7060_v30 }
 0x1ce   :  { %4209 = vmatprep.subr.bf16.mxu1 %v6029_v33 }
 0x1d1   :  { %4210 = vmatpush2.bf16.msra.mxu1 %v6027_v1  ;;  %v6059_v1 = vld [vmem:[%s8146_s3 + $0x24c] ss:$16 sps:$4 sm:$0xff]  }
 0x1d2   :  { %4211 = vmatprep.subr.bf16.mxu1 %v6032_v2 }
 0x1d4   :  { %v2641_v6 = vpop.f32.mrf.mxu1 }
 0x1d5   :  { %4212 = vmatpush2.bf16.msra.mxu1 %v6030_v3  ;;  %v2642_v34 = vadd.f32 %v2641_v6, %v2601_v23  ;;  %v462_v3 = vrot.slane %v7535_v48, %v461_v21  ;;  %v6057_v6 = vld [vmem:[%s8146_s3 + $0x248] ss:$16 sps:$4 sm:$0xff]  }
 0x1d6   :  { %v2643_v10 = vpop.f32.mrf.mxu1  ;;  %4213 = vmatprep.subr.bf16.mxu1 %v6035_v4  ;;  %v6060_v48 = vld [vmem:[%s8146_s3 + $0x228] ss:$16 sps:$4 sm:$0xff]  }
 0x1d7   :  { %v2644_v49 = vadd.f32 %v2643_v10, %v2603_v32  ;;  %v6062_v10 = vld [vmem:[%s8146_s3 + $0x22c] ss:$16 sps:$4 sm:$0xff]   ;;  %v6069_v23 = vld [vmem:[%s8146_s3 + $0x3e8] ss:$16 sps:$4 sm:$0xff]  }
 0x1d8   :  { %v2645_v12 = vpop.f32.mrf.mxu1  ;;  %v6105_v21 = vld [vmem:[%s8146_s3 + $0x328] ss:$16 sps:$4 sm:$0xff]  }
 0x1d9   :  { %4214 = vmatpush2.bf16.msra.mxu1 %v6033_v7 }
 0x1da   :  { %v2646_v13 = vpop.f32.mrf.mxu1  ;;  %4215 = vmatprep.subr.bf16.mxu1 %v6038_v8 }
 0x1dc   :  { %v2723_v52 = vpop.f32.mrf.mxu1 }
 0x1dd   :  { %4216 = vmatpush2.bf16.msra.mxu1 %v6036_v29 }
 0x1de   :  { %v2725_v17 = vpop.f32.mrf.mxu1  ;;  %4217 = vmatprep.subr.bf16.mxu1 %v6041_v14 }
 0x1e0   :  { %v2727_v20 = vpop.f32.mrf.mxu1 }
 0x1e1   :  { %4218 = vmatpush2.bf16.msra.mxu1 %v6039_v15  ;;  %v6068_v15 = vld [vmem:[%s8146_s3 + $0x20c] ss:$16 sps:$4 sm:$0xff]  }
 0x1e2   :  { %v2728_v22 = vpop.f32.mrf.mxu1  ;;  %4310 = vmatprep.subr.bf16.mxu1 %v6044_v18 }
 0x1fc   :  { %v5325_v59 = vpop.f32.mrf.mxu1 }
 0x1fe   :  { %v5326_v5 = vpop.f32.mrf.mxu1 }
 0x1ff   :  { %v5327_v4 = vadd.f32 %v5326_v5, %v5325_v59  ;;  %v6071_v5 = vld [vmem:[%s8146_s3 + $0x3ec] ss:$16 sps:$4 sm:$0xff]  }
 0x200   :  { %v5328_v28 = vpop.f32.mrf.mxu1 }
 0x201   :  { %v2765_v13 = vadd.f32 %v5327_v4, %v462_v3  ;;  %v6114_v3 = vld [vmem:[%s8146_s3 + $0x8] ss:$16 sps:$4 sm:$0xff]   ;;  %v6122_v4 = vld [vmem:[%s8146_s3 + $0x60c] ss:$16 sps:$4 sm:$0xff]  }
 0x202   :  { %v5329_v31 = vpop.f32.mrf.mxu1 }
 0x203   :  { %v2682_v35 = vpop.f32.mrf.mxu0  ;;  %v6072_v31 = vld [vmem:[%s8146_s3 + $0xe8] ss:$16 sps:$4 sm:$0xff]  }
 0x204   :  { %v2683_v37 = vadd.f32 %v2682_v35, %v2642_v34  ;;  %v6077_v34 = vld [vmem:[%s8146_s3 + $0x3cc] ss:$16 sps:$4 sm:$0xff]  }
 0x205   :  { %v2684_v41 = vpop.f32.mrf.mxu0  ;;  %v6080_v35 = vld [vmem:[%s8146_s3 + $0xcc] ss:$16 sps:$4 sm:$0xff]  }
 0x206   :  { %v2724_v42 = vadd.f32 %v2723_v52, %v2683_v37  ;;  %v2685_v43 = vadd.f32 %v2684_v41, %v2644_v49  ;;  %v6075_v49 = vld [vmem:[%s8146_s3 + $0x3c8] ss:$16 sps:$4 sm:$0xff]   ;;  %v6083_v41 = vld [vmem:[%s8146_s3 + $0x3ac] ss:$16 sps:$4 sm:$0xff]  }
 0x207   :  { %v2686_v44 = vpop.f32.mrf.mxu0  ;;  %v6078_v37 = vld [vmem:[%s8146_s3 + $0xc8] ss:$16 sps:$4 sm:$0xff]  }
 0x208   :  { %v2726_v45 = vadd.f32 %v2725_v17, %v2685_v43  ;;  %v2894_v46 = vmax.f32 %v2724_v42, 0.0  ;;  %v6086_v42 = vld [vmem:[%s8146_s3 + $0xac] ss:$16 sps:$4 sm:$0xff]   ;;  %v6081_v43 = vld [vmem:[%s8146_s3 + $0x3a8] ss:$16 sps:$4 sm:$0xff]  }
 0x209   :  { %v2687_v50 = vpop.f32.mrf.mxu0  ;;  %v6089_v44 = vld [vmem:[%s8146_s3 + $0x38c] ss:$16 sps:$4 sm:$0xff]  }
 0x20a   :  { %v2895_v51 = vmax.f32 %v2726_v45, 0.0  ;;  %v7727_v55 = vpack.c.bf16 %v2894_v46, %v2894_v46  ;;  %v6092_v45 = vld [vmem:[%s8146_s3 + $0x8c] ss:$16 sps:$4 sm:$0xff]   ;;  %v6087_v46 = vld [vmem:[%s8146_s3 + $0x388] ss:$16 sps:$4 sm:$0xff]  }
 0x20b   :  { %v6090_v50 = vld [vmem:[%s8146_s3 + $0x88] ss:$16 sps:$4 sm:$0xff]  }
 0x20c   :  { %v7722_v53 = vpack.c.bf16 %v2895_v51, %v2895_v51  ;;  %v6095_v51 = vld [vmem:[%s8146_s3 + $0x36c] ss:$16 sps:$4 sm:$0xff]  }
 0x20e   :  { %4219 = vmatprep.mubr.bf16.mxu1 %v7722_v53 }
 0x20f   :  { %4220 = vmatmul.mubr.bf16.vlgmr.msra.gmra.mxu1 %v7727_v55 }
 0x210   :  { %4311 = vmatpush1.bf16.msra.mxu1 %v6042_v54  ;;  %4342 = vmatprep.mubr.bf16.mxu1 %v7590_v24  ;;  %v6051_v24 = vld [vmem:[%s8146_s3 + $0x288] ss:$16 sps:$4 sm:$0xff]   ;;  %v6098_v54 = vld [vmem:[%s8146_s3 + $0x6c] ss:$16 sps:$4 sm:$0xff]  }
 0x211   :  { %4312 = vmatprep.subr.bf16.mxu1 %v6047_v9  ;;  %v6093_v9 = vld [vmem:[%s8146_s3 + $0x368] ss:$16 sps:$4 sm:$0xff]  }
 0x214   :  { %4313 = vmatpush1.bf16.msra.mxu1 %v6045_v56  ;;  %v6096_v56 = vld [vmem:[%s8146_s3 + $0x68] ss:$16 sps:$4 sm:$0xff]  }
 0x215   :  { %4314 = vmatprep.subr.bf16.mxu1 %v6050_v58  ;;  %v6101_v58 = vld [vmem:[%s8146_s3 + $0x34c] ss:$16 sps:$4 sm:$0xff]  }
 0x218   :  { %4315 = vmatpush1.bf16.msra.mxu1 %v6048_v60  ;;  %v6104_v60 = vld [vmem:[%s8146_s3 + $0x4c] ss:$16 sps:$4 sm:$0xff]  }
 0x219   :  { %4316 = vmatprep.subr.bf16.mxu1 %v6053_v61  ;;  %v6099_v61 = vld [vmem:[%s8146_s3 + $0x348] ss:$16 sps:$4 sm:$0xff]  }
 0x21c   :  { %v5347_v19 = vpop.f32.mrf.mxu1  ;;  %4317 = vmatpush1.bf16.msra.mxu1 %v6051_v24  ;;  %v6102_v24 = vld [vmem:[%s8146_s3 + $0x48] ss:$16 sps:$4 sm:$0xff]  }
 0x21d   :  { %4318 = vmatprep.subr.bf16.mxu1 %v6056_v62  ;;  %v6107_v62 = vld [vmem:[%s8146_s3 + $0x32c] ss:$16 sps:$4 sm:$0xff]  }
 0x21e   :  { %v5348_v33 = vpop.f32.mrf.mxu1 }
 0x21f   :  { %v5349_v8 = vadd.f32 %v5348_v33, %v5347_v19  ;;  %v6110_v19 = vld [vmem:[%s8146_s3 + $0x2c] ss:$16 sps:$4 sm:$0xff]  }
 0x220   :  { %v5350_v2 = vpop.f32.mrf.mxu1  ;;  %4319 = vmatpush1.bf16.msra.mxu1 %v6054_v63  ;;  %v6108_v63 = vld [vmem:[%s8146_s3 + $0x28] ss:$16 sps:$4 sm:$0xff]   ;;  %v6113_v33 = vld [vmem:[%s8146_s3 + $0x30c] ss:$16 sps:$4 sm:$0xff]  }
 0x221   :  { %4320 = vmatprep.subr.bf16.mxu1 %v6059_v1  ;;  %v2805_v17 = vadd.f32 %v5349_v8, %v2765_v13  ;;  %v6116_v1 = vld [vmem:[%s8146_s3 + $0xc] ss:$16 sps:$4 sm:$0xff]   ;;  %v6111_v2 = vld [vmem:[%s8146_s3 + $0x308] ss:$16 sps:$4 sm:$0xff]  }
 0x222   :  { %v5351_v7 = vpop.f32.mrf.mxu1  ;;  %v6125_v8 = vld [vmem:[%s8146_s3 + $0x1cc] ss:$16 sps:$4 sm:$0xff]   ;;  %v6126_v13 = vld [vmem:[%s8146_s3 + $0x1a8] ss:$16 sps:$4 sm:$0xff]  }
 0x223   :  { %v5369_v12 = vpop.f32.mrf.mxu0  ;;  %v6120_v7 = vld [vmem:[%s8146_s3 + $0x608] ss:$16 sps:$4 sm:$0xff]  }
 0x224   :  { %v2884_v29 = vpop.f32.mrf.mxu1  ;;  %4321 = vmatpush1.bf16.msra.mxu1 %v6057_v6  ;;  %v6119_v6 = vld [vmem:[%s8146_s3 + $0x1ec] ss:$16 sps:$4 sm:$0xff]  }
 0x225   :  { %v5370_v14 = vpop.f32.mrf.mxu0  ;;  %4322 = vmatprep.subr.bf16.mxu1 %v6062_v10  ;;  %v6117_v10 = vld [vmem:[%s8146_s3 + $0x1e8] ss:$16 sps:$4 sm:$0xff]  }
 0x226   :  { %v5403_v52 = vpop.f32.mrf.mxu1  ;;  %v5371_v18 = vadd.f32 %v5370_v14, %v5369_v12  ;;  %v6123_v12 = vld [vmem:[%s8146_s3 + $0x1c8] ss:$16 sps:$4 sm:$0xff]  }
 0x227   :  { %v5372_v20 = vpop.f32.mrf.mxu0  ;;  %v6129_v14 = vld [vmem:[%s8146_s3 + $0x188] ss:$16 sps:$4 sm:$0xff]  }
 0x228   :  { %v2887_v22 = vpop.f32.mrf.mxu1  ;;  %v2845_v25 = vadd.f32 %v5371_v18, %v2805_v17  ;;  %4323 = vmatpush1.bf16.msra.mxu1 %v6060_v48  ;;  %v6192_v48 = vld [vmem:[%s8148_s5 + $0x78] sm:$0xff]   ;;  %v6194_v17 = vld [vmem:[%s8148_s5 + $0x70] sm:$0xff]   ;;  %v6196_v20 = vld [vmem:[%s8148_s5 + $0x68] sm:$0xff]  }
 0x229   :  { %v5373_v59 = vpop.f32.mrf.mxu0  ;;  %4324 = vmatprep.subr.bf16.mxu1 %v6068_v15  ;;  %v6193_v52 = vld [vmem:[%s8148_s5 + $0x38] sm:$0xff]   ;;  %v6195_v18 = vld [vmem:[%s8148_s5 + $0x30] sm:$0xff]   ;;  %v7929_v22 = vld [vmem:[%s8149_s4] sm:$0xf] }
 0x22a   :  { %v5404_v27 = vpop.f32.mrf.mxu1  ;;  %v2885_v0 = vadd.f32 %v2884_v29, %v2845_v25  ;;  %v6128_v29 = vld [vmem:[%s8146_s3 + $0x1ac] ss:$16 sps:$4 sm:$0xff]   ;;  %v6132_v25 = vld [vmem:[%s8146_s3 + $0x168] ss:$16 sps:$4 sm:$0xff]  }
 0x22b   :  { %v6134_v15 = vld [vmem:[%s8146_s3 + $0x16c] ss:$16 sps:$4 sm:$0xff]   ;;  %v6198_v27 = vld [vmem:[%s8148_s5 + $0x60] sm:$0xff]  }
 0x22c   :  { %v2896_v28 = vmax.f32 %v2885_v0, 0.0  ;;  %4325 = vmatpush1.bf16.msra.mxu1 %v6066_v26  ;;  %v6137_v26 = vld [vmem:[%s8146_s3 + $0x14c] ss:$16 sps:$4 sm:$0xff]   ;;  %v3105_v0 = vrot.slane %v7929_v22, %v437_v38 }
 0x22d   :  { %4326 = vmatprep.subr.bf16.mxu1 %v6071_v5  ;;  %v6197_v59 = vld [vmem:[%s8148_s5 + $0x28] sm:$0xff]  }
 0x22e   :  { %v7785_v32 = vpack.c.bf16 %v2896_v28, %v2896_v28  ;;  %v6135_v5 = vld [vmem:[%s8146_s3 + $0x148] ss:$16 sps:$4 sm:$0xff]   ;;  %v6140_v28 = vld [vmem:[%s8146_s3 + $0x12c] ss:$16 sps:$4 sm:$0xff]  }
 0x230   :  { %4327 = vmatpush2.bf16.msra.mxu1 %v6069_v23  ;;  %5280 = vmatmul.mubr.msk.bf16.vlgmr.msra.gmra.mxu0 %vm2234_vm0, %v7785_v32  ;;  %v6199_v23 = vld [vmem:[%s8148_s5 + $0x20] sm:$0xff]  }
 0x231   :  { %4270 = vmatpush1.bf16.msra.mxu0 %v6072_v31  ;;  %4301 = vmatprep.mubr.bf16.mxu0 %v7401_v57  ;;  %v6084_v57 = vld [vmem:[%s8146_s3 + $0xa8] ss:$16 sps:$4 sm:$0xff]  }
 0x232   :  { %4328 = vmatprep.subr.bf16.mxu1 %v6077_v34  ;;  %4271 = vmatprep.subr.bf16.mxu0 %v6080_v35  ;;  %v6200_v31 = vld [vmem:[%s8148_s5 + $0x58] sm:$0xff]  }
 0x233   :  { %v6138_v34 = vld [vmem:[%s8146_s3 + $0x128] ss:$16 sps:$4 sm:$0xff]  }
 0x234   :  { %4329 = vmatpush2.bf16.msra.mxu1 %v6075_v49  ;;  %v6201_v35 = vld [vmem:[%s8148_s5 + $0x18] sm:$0xff]  }
 0x235   :  { %4272 = vmatpush1.bf16.msra.mxu0 %v6078_v37  ;;  %4330 = vmatprep.subr.bf16.mxu1 %v6083_v41  ;;  %v6143_v41 = vld [vmem:[%s8146_s3 + $0x10c] ss:$16 sps:$4 sm:$0xff]  }
 0x236   :  { %4273 = vmatprep.subr.bf16.mxu0 %v6086_v42 }
 0x238   :  { %4331 = vmatpush2.bf16.msra.mxu1 %v6081_v43 }
 0x239   :  { %4274 = vmatpush1.bf16.msra.mxu0 %v6084_v57  ;;  %4332 = vmatprep.subr.bf16.mxu1 %v6089_v44 }
 0x23a   :  { %4275 = vmatprep.subr.bf16.mxu0 %v6092_v45 }
 0x23c   :  { %4333 = vmatpush2.bf16.msra.mxu1 %v6087_v46  ;;  %v6141_v46 = vld [vmem:[%s8146_s3 + $0x108] ss:$16 sps:$4 sm:$0xff]  }
 0x23d   :  { %4276 = vmatpush1.bf16.msra.mxu0 %v6090_v50  ;;  %4334 = vmatprep.subr.bf16.mxu1 %v6095_v51  ;;  %v6203_v50 = vld [vmem:[%s8148_s5 + $0x10] sm:$0xff]  }
 0x23e   :  { %4277 = vmatprep.subr.bf16.mxu0 %v6098_v54 }
 0x240   :  { %4335 = vmatpush2.bf16.msra.mxu1 %v6093_v9 }
 0x241   :  { %4278 = vmatpush1.bf16.msra.mxu0 %v6096_v56  ;;  %4336 = vmatprep.subr.bf16.mxu1 %v6101_v58  ;;  %v6146_v58 = vld [vmem:[%s8146_s3 + $0x4ec] ss:$16 sps:$4 sm:$0xff]  }
 0x242   :  { %4279 = vmatprep.subr.bf16.mxu0 %v6104_v60  ;;  %v6144_v60 = vld [vmem:[%s8146_s3 + $0x4e8] ss:$16 sps:$4 sm:$0xff]  }
 0x244   :  { %4337 = vmatpush2.bf16.msra.mxu1 %v6099_v61  ;;  %v6149_v61 = vld [vmem:[%s8146_s3 + $0x4cc] ss:$16 sps:$4 sm:$0xff]  }
 0x245   :  { %4280 = vmatpush1.bf16.msra.mxu0 %v6102_v24  ;;  %4338 = vmatprep.subr.bf16.mxu1 %v6107_v62  ;;  %v6147_v24 = vld [vmem:[%s8146_s3 + $0x4c8] ss:$16 sps:$4 sm:$0xff]   ;;  %v6152_v62 = vld [vmem:[%s8146_s3 + $0x4ac] ss:$16 sps:$4 sm:$0xff]  }
 0x246   :  { %4281 = vmatprep.subr.bf16.mxu0 %v6110_v19  ;;  %v6204_v19 = vld [vmem:[%s8148_s5 + $0x48] sm:$0xff]  }
 0x248   :  { %4339 = vmatpush2.bf16.msra.mxu1 %v6105_v21  ;;  %v6155_v21 = vld [vmem:[%s8146_s3 + $0x48c] ss:$16 sps:$4 sm:$0xff]  }
 0x249   :  { %4282 = vmatpush1.bf16.msra.mxu0 %v6108_v63  ;;  %4340 = vmatprep.subr.bf16.mxu1 %v6113_v33  ;;  %v6206_v63 = vld [vmem:[%s8148_s5 + $0x40] sm:$0xff]  }
 0x24a   :  { %4283 = vmatprep.subr.bf16.mxu0 %v6116_v1  ;;  %v6207_v33 = vld [vmem:[%s8148_s5] sm:$0xff]   ;;  %v6153_v1 = vld [vmem:[%s8146_s3 + $0x488] ss:$16 sps:$4 sm:$0xff]  }
 0x24c   :  { %4341 = vmatpush2.bf16.msra.mxu1 %v6111_v2  ;;  %v6158_v2 = vld [vmem:[%s8146_s3 + $0x46c] ss:$16 sps:$4 sm:$0xff]  }
 0x24d   :  { %4284 = vmatpush1.bf16.msra.mxu0 %v6114_v3  ;;  %4406 = vmatprep.subr.bf16.mxu1 %v6122_v4  ;;  %v6156_v3 = vld [vmem:[%s8146_s3 + $0x468] ss:$16 sps:$4 sm:$0xff]   ;;  %v6161_v4 = vld [vmem:[%s8146_s3 + $0x44c] ss:$16 sps:$4 sm:$0xff]  }
 0x24e   :  { %4285 = vmatprep.subr.bf16.mxu0 %v6119_v6  ;;  %v6159_v6 = vld [vmem:[%s8146_s3 + $0x448] ss:$16 sps:$4 sm:$0xff]  }
 0x24f   :  { %4343 = vmatmul.mubr.bf16.vlgmr.msra.gmra.mxu1 %v7614_v11  ;;  %v6131_v11 = vld [vmem:[%s8146_s3 + $0x18c] ss:$16 sps:$4 sm:$0xff]  }
 0x250   :  { %4407 = vmatpush1.bf16.msra.mxu1 %v6120_v7  ;;  %4424 = vmatprep.mubr.bf16.mxu1 %v6218_v16  ;;  %v6164_v7 = vld [vmem:[%s8146_s3 + $0x42c] ss:$16 sps:$4 sm:$0xff]  }
 0x251   :  { %4286 = vmatpush2.bf16.msra.mxu0 %v6117_v10  ;;  %5377 = vmatprep.subr.bf16.mxu1 %v6192_v48  ;;  %v6162_v10 = vld [vmem:[%s8146_s3 + $0x428] ss:$16 sps:$4 sm:$0xff]  }
 0x252   :  { %4287 = vmatprep.subr.bf16.mxu0 %v6125_v8  ;;  %v6167_v8 = vld [vmem:[%s8146_s3 + $0x40c] ss:$16 sps:$4 sm:$0xff]   ;;  %v6171_v48 = vld [vmem:[%s8146_s3 + $0x5c8] ss:$16 sps:$4 sm:$0xff]  }
 0x255   :  { %4288 = vmatpush2.bf16.msra.mxu0 %v6123_v12  ;;  %v6165_v12 = vld [vmem:[%s8146_s3 + $0x408] ss:$16 sps:$4 sm:$0xff]  }
 0x256   :  { %4289 = vmatprep.subr.bf16.mxu0 %v6128_v29  ;;  %v6170_v29 = vld [vmem:[%s8146_s3 + $0x5ec] ss:$16 sps:$4 sm:$0xff]  }
 0x257   :  { %5281 = vmatmul.mubr.msk.bf16.vlgmr.msra.gmra.mxu1 %vm2234_vm0, %v7785_v32  ;;  %v3109_v32 = vrot.slane %v7929_v22, %v441_v40  ;;  %v6202_v40 = vld [vmem:[%s8148_s5 + $0x50] sm:$0xff]  }
 0x258   :  { %5378 = vmatpush3.bf16.msra.mxu1 %v6193_v52  ;;  %v6174_v52 = vld [vmem:[%s8146_s3 + $0x5a8] ss:$16 sps:$4 sm:$0xff]  }
 0x259   :  { %4290 = vmatpush2.bf16.msra.mxu0 %v6126_v13  ;;  %5379 = vmatprep.subr.bf16.mxu1 %v6194_v17  ;;  %v6168_v13 = vld [vmem:[%s8146_s3 + $0x5e8] ss:$16 sps:$4 sm:$0xff]  }
 0x25a   :  { %4291 = vmatprep.subr.bf16.mxu0 %v6131_v11  ;;  %v6173_v11 = vld [vmem:[%s8146_s3 + $0x5cc] ss:$16 sps:$4 sm:$0xff]   ;;  %v6177_v17 = vld [vmem:[%s8146_s3 + $0x588] ss:$16 sps:$4 sm:$0xff]  }
 0x25c   :  { %5380 = vmatpush3.bf16.msra.mxu1 %v6195_v18  ;;  %v6182_v18 = vld [vmem:[%s8146_s3 + $0x56c] ss:$16 sps:$4 sm:$0xff]  }
 0x25d   :  { %4292 = vmatpush2.bf16.msra.mxu0 %v6129_v14  ;;  %5381 = vmatprep.subr.bf16.mxu1 %v6196_v20  ;;  %v6176_v14 = vld [vmem:[%s8146_s3 + $0x5ac] ss:$16 sps:$4 sm:$0xff]   ;;  %v6180_v20 = vld [vmem:[%s8146_s3 + $0x568] ss:$16 sps:$4 sm:$0xff]  }
 0x25e   :  { %4293 = vmatprep.subr.bf16.mxu0 %v6134_v15  ;;  %v6179_v15 = vld [vmem:[%s8146_s3 + $0x58c] ss:$16 sps:$4 sm:$0xff]  }
 0x260   :  { %5382 = vmatpush3.bf16.msra.mxu1 %v6197_v59  ;;  %v6188_v59 = vld [vmem:[%s8146_s3 + $0x52c] ss:$16 sps:$4 sm:$0xff]  }
 0x261   :  { %4294 = vmatpush2.bf16.msra.mxu0 %v6132_v25  ;;  %5383 = vmatprep.subr.bf16.mxu1 %v6198_v27  ;;  %v6185_v25 = vld [vmem:[%s8146_s3 + $0x54c] ss:$16 sps:$4 sm:$0xff]   ;;  %v6186_v27 = vld [vmem:[%s8146_s3 + $0x528] ss:$16 sps:$4 sm:$0xff]  }
 0x262   :  { %4295 = vmatprep.subr.bf16.mxu0 %v6137_v26  ;;  %v6183_v26 = vld [vmem:[%s8146_s3 + $0x548] ss:$16 sps:$4 sm:$0xff]  }
 0x263   :  { %v4180_v37 = vpop.f32.mrf.mxu0 }
 0x264   :  { %v4139_v38 = vpop.f32.mrf.mxu1  ;;  %5384 = vmatpush3.bf16.msra.mxu1 %v6199_v23  ;;  %v6209_v23 = vld [vmem:[%s8148_s5 + $0xb0] sm:$0xff]  }
 0x265   :  { %v4140_v49 = vadd.f32 %v4139_v38, %v3105_v0  ;;  %4296 = vmatpush2.bf16.msra.mxu0 %v6135_v5  ;;  %v4182_v44 = vpop.f32.mrf.mxu0  ;;  %5385 = vmatprep.subr.bf16.mxu1 %v6200_v31  ;;  %v6191_v5 = vld [vmem:[%s8146_s3 + $0x50c] ss:$16 sps:$4 sm:$0xff]   ;;  %v6189_v0 = vld [vmem:[%s8146_s3 + $0x508] ss:$16 sps:$4 sm:$0xff]   ;;  %v6213_v38 = vld [vmem:[%s8148_s5 + $0x90] sm:$0xff]  }
 0x266   :  { %v4141_v42 = vpop.f32.mrf.mxu1  ;;  %4297 = vmatprep.subr.bf16.mxu0 %v6140_v28  ;;  %v6208_v28 = vld [vmem:[%s8148_s5 + $0xb8] sm:$0xff]   ;;  %v6210_v31 = vld [vmem:[%s8148_s5 + $0xa8] sm:$0xff]  }
 0x267   :  { %v4142_v43 = vadd.f32 %v4141_v42, %v3109_v32  ;;  %v7973_v57 = vadd.f32 %v4180_v37, %v4140_v49  ;;  %v4184_v54 = vpop.f32.mrf.mxu0  ;;  %v6212_v32 = vld [vmem:[%s8148_s5 + $0x98] sm:$0xff]  }
 0x268   :  { %v4143_v45 = vpop.f32.mrf.mxu1  ;;  %5386 = vmatpush3.bf16.msra.mxu1 %v6201_v35 }
 0x269   :  { %v7981_v51 = vadd.f32 %v4182_v44, %v4142_v43  ;;  %4298 = vmatpush2.bf16.msra.mxu0 %v6138_v34  ;;  %v4185_v56 = vpop.f32.mrf.mxu0  ;;  %5387 = vmatprep.subr.bf16.mxu1 %v6202_v40  ;;  %v6214_v45 = vld [vmem:[%s8148_s5 + $0x88] sm:$0xff]  }
 0x26a   :  { %v4144_v9 = vpop.f32.mrf.mxu1  ;;  %4299 = vmatprep.subr.bf16.mxu0 %v6143_v41 }
 0x26c   :  { %5388 = vmatpush3.bf16.msra.mxu1 %v6203_v50 }
 0x26d   :  { %4300 = vmatpush2.bf16.msra.mxu0 %v6141_v46  ;;  %5389 = vmatprep.subr.bf16.mxu1 %v6204_v19 }
 0x26e   :  { %4351 = vmatprep.subr.bf16.mxu0 %v6146_v58 }
 0x270   :  { %4302 = vmatmul.mubr.bf16.vlgmr.msra.gmra.mxu0 %v7609_v36  ;;  %v6150_v36 = vld [vmem:[%s8146_s3 + $0x4a8] ss:$16 sps:$4 sm:$0xff]  }
 0x271   :  { %4352 = vmatpush1.bf16.msra.mxu0 %v6144_v60  ;;  %4383 = vmatprep.mubr.bf16.mxu0 %v7722_v53  ;;  %v6205_v53 = vld [vmem:[%s8148_s5 + $0x8] sm:$0xff]   ;;  %v6216_v60 = vld [vmem:[%s8148_s5 + $0xc0] ss:$0 sps:$4 sm:$0xff]  }
 0x272   :  { %4353 = vmatprep.subr.bf16.mxu0 %v6149_v61  ;;  %5390 = vmatpush3.bf16.msra.mxu1 %v6205_v53  ;;  %v4650_v61 = vsel %vm4648_vm2, %v6216_v60, 0 }
 0x273   :  { %5391 = vmatprep.subr.bf16.mxu1 %v6206_v63 }
 0x275   :  { %4354 = vmatpush1.bf16.msra.mxu0 %v6147_v24 }
 0x276   :  { %4355 = vmatprep.subr.bf16.mxu0 %v6152_v62  ;;  %5392 = vmatpush3.bf16.msra.mxu1 %v6207_v33 }
 0x279   :  { %4356 = vmatpush1.bf16.msra.mxu0 %v6150_v36 }
 0x27a   :  { %4357 = vmatprep.subr.bf16.mxu0 %v6155_v21 }
 0x27d   :  { %4358 = vmatpush1.bf16.msra.mxu0 %v6153_v1 }
 0x27e   :  { %4359 = vmatprep.subr.bf16.mxu0 %v6158_v2 }
 0x281   :  { %4360 = vmatpush1.bf16.msra.mxu0 %v6156_v3 }
 0x282   :  { %4361 = vmatprep.subr.bf16.mxu0 %v6161_v4  ;;  %v3113_v4 = vrot.slane %v7929_v22, %v445_v47 }
 0x285   :  { %4362 = vmatpush1.bf16.msra.mxu0 %v6159_v6  ;;  %v3117_v6 = vrot.slane %v7929_v22, %v449_v39 }
 0x286   :  { %4363 = vmatprep.subr.bf16.mxu0 %v6164_v7 }
 0x289   :  { %4364 = vmatpush1.bf16.msra.mxu0 %v6162_v10 }
 0x28a   :  { %4365 = vmatprep.subr.bf16.mxu0 %v6167_v8 }
 0x28d   :  { %4366 = vmatpush1.bf16.msra.mxu0 %v6165_v12 }
 0x28e   :  { %4367 = vmatprep.subr.bf16.mxu0 %v6170_v29 }
 0x291   :  { %4368 = vmatpush2.bf16.msra.mxu0 %v6168_v13 }
 0x292   :  { %4369 = vmatprep.subr.bf16.mxu0 %v6173_v11 }
 0x295   :  { %4370 = vmatpush2.bf16.msra.mxu0 %v6171_v48 }
 0x296   :  { %4371 = vmatprep.subr.bf16.mxu0 %v6176_v14 }
 0x299   :  { %4372 = vmatpush2.bf16.msra.mxu0 %v6174_v52 }
 0x29a   :  { %4373 = vmatprep.subr.bf16.mxu0 %v6179_v15 }
 0x29d   :  { %4374 = vmatpush2.bf16.msra.mxu0 %v6177_v17 }
 0x29e   :  { %4375 = vmatprep.subr.bf16.mxu0 %v6182_v18 }
 0x2a1   :  { %4376 = vmatpush2.bf16.msra.mxu0 %v6180_v20 }
 0x2a2   :  { %4377 = vmatprep.subr.bf16.mxu0 %v6185_v25 }
 0x2a5   :  { %4378 = vmatpush2.bf16.msra.mxu0 %v6183_v26 }
 0x2a6   :  { %4379 = vmatprep.subr.bf16.mxu0 %v6188_v59 }
 0x2a9   :  { %4380 = vmatpush2.bf16.msra.mxu0 %v6186_v27  ;;  %v5282_v27 = vld [vmem:[%s8150_s6] ss:$0 sm:$0xff] }
 0x2aa   :  { %4381 = vmatprep.subr.bf16.mxu0 %v6191_v5 }
 0x2ad   :  { %4382 = vmatpush2.bf16.msra.mxu0 %v6189_v0 }
 0x2ae   :  { %4692 = vmatprep.subr.bf16.mxu0 %v6218_v16 }
 0x2b0   :  { %4384 = vmatmul.mubr.bf16.vlgmr.msra.gmra.mxu0 %v7727_v55  ;;  %v6211_v55 = vld [vmem:[%s8148_s5 + $0xa0] sm:$0xff]  }
 0x2b1   :  { %4693 = vmatpush1.bf16.msra.mxu0 %v6208_v28 }
 0x2b2   :  { %4694 = vmatprep.subr.bf16.mxu0 %v6218_v16 }
 0x2b5   :  { %4695 = vmatpush1.bf16.msra.mxu0 %v6209_v23 }
 0x2b6   :  { %4696 = vmatprep.subr.bf16.mxu0 %v6218_v16 }
 0x2b9   :  { %4697 = vmatpush1.bf16.msra.mxu0 %v6210_v31 }
 0x2ba   :  { %4698 = vmatprep.subr.bf16.mxu0 %v6218_v16 }
 0x2bd   :  { %4699 = vmatpush1.bf16.msra.mxu0 %v6211_v55 }
 0x2be   :  { %4700 = vmatprep.subr.bf16.mxu0 %v6218_v16 }
 0x2c1   :  { %4701 = vmatpush1.bf16.msra.mxu0 %v6212_v32 }
 0x2c2   :  { %4702 = vmatprep.subr.bf16.mxu0 %v6218_v16 }
 0x2c5   :  { %4703 = vmatpush1.bf16.msra.mxu0 %v6213_v38 }
 0x2c6   :  { %4704 = vmatprep.subr.bf16.mxu0 %v6218_v16 }
 0x2c9   :  { %4705 = vmatpush1.bf16.msra.mxu0 %v6214_v45 }
 0x2ca   :  { %4706 = vmatprep.subr.bf16.mxu0 %v6218_v16 }
 0x2cf   :  { %v4221_v34 = vpop.f32.mrf.mxu1 }
 0x2d0   :  { %v4222_v41 = vadd.f32 %v4221_v34, %v7973_v57  ;;  %v6215_v57 = vld [vmem:[%s8148_s5 + $0x80] sm:$0xff]  }
 0x2d1   :  { %v4223_v35 = vpop.f32.mrf.mxu1  ;;  %4707 = vmatpush1.bf16.msra.mxu0 %v6215_v57 }
 0x2d2   :  { %v4224_v42 = vadd.f32 %v4223_v35, %v7981_v51  ;;  %4722 = vmatprep.subr.bf16.mxu0 %v6218_v16 }
 0x2d3   :  { %v4225_v49 = vpop.f32.mrf.mxu1 }
 0x2d5   :  { %v4226_v37 = vpop.f32.mrf.mxu1  ;;  %4723 = vmatpush2.bf16.msra.mxu0 %v4650_v61 }
 0x2f0   :  { %v4262_v40 = vpop.f32.mrf.mxu0 }
 0x2f1   :  { %v4263_v43 = vadd.f32 %v4262_v40, %v4222_v41 }
 0x2f2   :  { %v4264_v44 = vpop.f32.mrf.mxu0 }
 0x2f3   :  { %v4265_v46 = vadd.f32 %v4264_v44, %v4224_v42  ;;  %v4433_v50 = vmax.f32 %v4263_v43, 0.0 }
 0x2f4   :  { %v4266_v54 = vpop.f32.mrf.mxu0 }
 0x2f5   :  { %v4434_v9 = vmax.f32 %v4265_v46, 0.0  ;;  %v4437_v51 = vpack.c.bf16 %v4433_v50, %v4433_v50 }
 0x2f6   :  { %v4267_v56 = vpop.f32.mrf.mxu0 }
 0x2f7   :  { %v4438_v58 = vpack.c.bf16 %v4434_v9, %v4434_v9 }
 0x2f9   :  { %4684 = vmatprep.mubr.bf16.mxu1 %v4438_v58 }
 0x2fa   :  { %4685 = vmatmul.mubr.bf16.vlgmr.msra.gmra.mxu1 %v4437_v51 }
 0x30f   :  { %v4344_v24 = vpop.f32.mrf.mxu1 }
 0x311   :  { %v4346_v62 = vpop.f32.mrf.mxu1 }
 0x313   :  { %v4348_v19 = vpop.f32.mrf.mxu1 }
 0x315   :  { %v4349_v36 = vpop.f32.mrf.mxu1 }
 0x317   :  { %v4426_v53 = vpop.f32.mrf.mxu1 }
 0x319   :  { %v4428_v21 = vpop.f32.mrf.mxu1 }
 0x31b   :  { %v4430_v63 = vpop.f32.mrf.mxu1 }
 0x31d   :  { %v4431_v33 = vpop.f32.mrf.mxu1 }
 0x330   :  { %v4303_v1 = vpop.f32.mrf.mxu0 }
 0x331   :  { %v4304_v7 = vadd.f32 %v4303_v1, %v3113_v4 }
 0x332   :  { %v4305_v2 = vpop.f32.mrf.mxu0 }
 0x333   :  { %v4306_v10 = vadd.f32 %v4305_v2, %v3117_v6  ;;  %v4345_v8 = vadd.f32 %v4344_v24, %v4304_v7 }
 0x334   :  { %v4307_v3 = vpop.f32.mrf.mxu0 }
 0x335   :  { %v4347_v13 = vadd.f32 %v4346_v62, %v4306_v10 }
 0x336   :  { %v4308_v16 = vpop.f32.mrf.mxu0 }
 0x370   :  { %v4385_v12 = vpop.f32.mrf.mxu0 }
 0x371   :  { %v4386_v29 = vadd.f32 %v4385_v12, %v4345_v8 }
 0x372   :  { %v4387_v11 = vpop.f32.mrf.mxu0 }
 0x373   :  { %v4427_v48 = vadd.f32 %v4426_v53, %v4386_v29  ;;  %v4388_v14 = vadd.f32 %v4387_v11, %v4347_v13 }
 0x374   :  { %v4389_v52 = vpop.f32.mrf.mxu0 }
 0x375   :  { %v4429_v15 = vadd.f32 %v4428_v21, %v4388_v14  ;;  %v4435_v17 = vmax.f32 %v4427_v48, 0.0 }
 0x376   :  { %v4390_v18 = vpop.f32.mrf.mxu0 }
 0x377   :  { %v4436_v20 = vmax.f32 %v4429_v15, 0.0  ;;  %v4439_v25 = vpack.c.bf16 %v4435_v17, %v4435_v17 }
 0x379   :  { %v4440_v47 = vpack.c.bf16 %v4436_v20, %v4436_v20 }
 0x37b   :  { %5308 = vmatprep.mubr.msk.bf16.mxu0 %vm4644_vm3, %v4440_v47 }
 0x37c   :  { %4725 = vmatmul.mubr.bf16.vlgmr.msra.gmra.mxu0 %v4439_v25 }
 0x3ba   :  { %v5393_v30 = vpop.f32.mrf.mxu1 }
 0x3bc   :  { %v5394_v39 = vpop.f32.mrf.mxu1 }
 0x3bd   :  { %v5395_v22 = vadd.f32 %v5394_v39, %v5393_v30 }
 0x3be   :  { %v5396_v26 = vpop.f32.mrf.mxu1 }
 0x3bf   :  { %v4687_v5 = vadd.f32 %v5395_v22, %v5282_v27 }
 0x3c0   :  { %v5397_v59 = vpop.f32.mrf.mxu1 }
 0x43c   :  { %v4726_v0 = vpop.f32.mrf.mxu0 }
 0x43d   :  { %v4727_v28 = vadd.f32 %v4726_v0, %v4687_v5 }
 0x43e   :  { %v4728_v23 = vpop.f32.mrf.mxu0 }
 0x43f   :  { %4732 = vst [vmem:[%s8151_s7] sm:$0xff] %v4727_v28 }
 0x440   :  { %v4729_v31 = vpop.f32.mrf.mxu0 }
 0x442   :  { %v4730_v55 = vpop.f32.mrf.mxu0 }

</bundles_post_ra>
